<compile_context>
chip_gen: v6e
topology: v6e:2x2x1
jax: 0.10.0
libtpu: 0.0.40
codegen_flags: <defaults>
</compile_context>

<pallas_src>
import functools
import operator

import jax
import jax.numpy as jnp
from jax.experimental import pallas as pl
from jax.experimental.pallas import tpu as pltpu

CODE_SIZE = 2
DATA_SHAPE = [28, 28]
HIDDEN = 200

# Padded, lane-friendly sizes used inside the kernel.
HIDDEN_PAD = 256          # 200 -> 256 (multiple of 128)
HEAD_PAD = 128            # fused loc|scale head padded to one lane-dense 128-wide slab
ROW_ALIGN = 128           # batch-tile granularity (full MXU M-passes, full sublane tiles)
TM_MAX = 2048             # max rows per grid step (bf16 x tile: 2048*784*2B ~= 3.2 MiB)


def _prob(shape):
    return functools.reduce(operator.mul, shape)


def _round_up(x, m):
    return -(-x // m) * m


def encoder_kernel(x_ref, w1_ref, b1_ref, w2_ref, b2_ref, wh_ref, bh_ref, out_ref):
    """One batch tile: fc1 -> relu -> fc2 -> relu -> fused (loc|scale) head."""
    x = x_ref[...]                                                    # (tm, 784) bf16

    # fc1 + relu  (bf16 x bf16 -> f32 accumulation on the MXU)
    h = jnp.dot(x, w1_ref[...], preferred_element_type=jnp.float32) + b1_ref[...]
    h = jnp.maximum(h, 0.0).astype(jnp.bfloat16)

    # fc2 + relu
    h = jnp.dot(h, w2_ref[...], preferred_element_type=jnp.float32) + b2_ref[...]
    h = jnp.maximum(h, 0.0).astype(jnp.bfloat16)

    # Fused head: lanes [0, CODE) = loc, [CODE, 2*CODE) = pre-softplus scale,
    # remaining lanes are zero padding (kept so the output store is lane-dense).
    y = jnp.dot(h, wh_ref[...], preferred_element_type=jnp.float32) + bh_ref[...]

    # Numerically-stable softplus, applied on the scale lanes via a lane mask
    # (exp/log1p run on the EUP slot, so the extra padded lanes are ~free).
    sp = jnp.maximum(y, 0.0) + jnp.log1p(jnp.exp(-jnp.abs(y)))
    lane = jax.lax.broadcasted_iota(jnp.int32, y.shape, 1)
    is_scale = (lane >= CODE_SIZE) & (lane < 2 * CODE_SIZE)
    out_ref[...] = jnp.where(is_scale, sp, y).astype(out_ref.dtype)


def init_params(key, in_dim, hidden, code_size):
    """Deterministic init mimicking nn.Linear (uniform +/- 1/sqrt(fan_in))."""
    def linear(k, fan_in, fan_out):
        kw, kb = jax.random.split(k)
        bound = 1.0 / jnp.sqrt(jnp.float32(fan_in))
        w = jax.random.uniform(kw, (fan_in, fan_out), jnp.float32, -bound, bound)
        b = jax.random.uniform(kb, (1, fan_out), jnp.float32, -bound, bound)
        return w, b

    k1, k2, k3, k4 = jax.random.split(key, 4)
    w1, b1 = linear(k1, in_dim, hidden)
    w2, b2 = linear(k2, hidden, hidden)
    wl, bl = linear(k3, hidden, code_size)
    ws, bs = linear(k4, hidden, code_size)
    return dict(w1=w1, b1=b1, w2=w2, b2=b2, wl=wl, bl=bl, ws=ws, bs=bs)


def _pack_params(params):
    """Zero-pad hidden dim to 256, fuse/pad the heads to a 128-wide slab, cast weights bf16."""
    pad_h = HIDDEN_PAD - HIDDEN
    bf = jnp.bfloat16
    w1 = jnp.pad(params["w1"], ((0, 0), (0, pad_h))).astype(bf)
    b1 = jnp.pad(params["b1"], ((0, 0), (0, pad_h)))                          # f32
    w2 = jnp.pad(params["w2"], ((0, pad_h), (0, pad_h))).astype(bf)
    b2 = jnp.pad(params["b2"], ((0, 0), (0, pad_h)))                          # f32
    wh = jnp.concatenate([params["wl"], params["ws"]], axis=1)                # (HIDDEN, 2*CODE)
    wh = jnp.pad(wh, ((0, pad_h), (0, HEAD_PAD - 2 * CODE_SIZE))).astype(bf)
    bh = jnp.concatenate([params["bl"], params["bs"]], axis=1)
    bh = jnp.pad(bh, ((0, 0), (0, HEAD_PAD - 2 * CODE_SIZE)))                 # f32
    return w1, b1, w2, b2, wh, bh


def _choose_tile(batch):
    """128-aligned row tile that minimizes padding, caps at TM_MAX and yields
    >= 2 grid steps whenever there is enough work for both v7x TensorCores."""
    padded = _round_up(batch, ROW_ALIGN)
    min_steps = 2 if padded > 2 * ROW_ALIGN else 1
    steps = max(min_steps, -(-padded // TM_MAX))
    tm = min(TM_MAX, _round_up(-(-batch // steps), ROW_ALIGN))
    grid_steps = -(-batch // tm)
    return tm, tm * grid_steps


@jax.jit
def encoder_forward(x, params):
    in_dim = params["w1"].shape[0]
    x2 = x.reshape((-1, in_dim)).astype(jnp.bfloat16)   # x.view([-1, data_shape]), bf16 stream
    batch = x2.shape[0]

    tm, padded_b = _choose_tile(batch)
    if padded_b != batch:
        x2 = jnp.pad(x2, ((0, padded_b - batch), (0, 0)))

    w1, b1, w2, b2, wh, bh = _pack_params(params)
    grid = (padded_b // tm,)

    def resident(shape):
        # Constant index_map: DMA'd once, stays resident in VMEM across the grid.
        return pl.BlockSpec(shape, lambda i: (0, 0))

    flops = 2 * padded_b * (in_dim * HIDDEN_PAD
                            + HIDDEN_PAD * HIDDEN_PAD
                            + HIDDEN_PAD * HEAD_PAD)
    transcendentals = 2 * padded_b * HEAD_PAD                   # exp + log1p per head element
    bytes_accessed = (2 * padded_b * (in_dim + HEAD_PAD)        # bf16 x in + bf16 out
                      + 2 * (in_dim * HIDDEN_PAD               # bf16 weights
                             + HIDDEN_PAD * HIDDEN_PAD
                             + HIDDEN_PAD * HEAD_PAD)
                      + 4 * (2 * HIDDEN_PAD + HEAD_PAD))        # f32 biases

    out = pl.pallas_call(
        encoder_kernel,
        out_shape=jax.ShapeDtypeStruct((padded_b, HEAD_PAD), jnp.bfloat16),
        grid=grid,
        in_specs=[
            pl.BlockSpec((tm, in_dim), lambda i: (i, 0)),       # streamed x tiles
            resident((in_dim, HIDDEN_PAD)),
            resident((1, HIDDEN_PAD)),
            resident((HIDDEN_PAD, HIDDEN_PAD)),
            resident((1, HIDDEN_PAD)),
            resident((HIDDEN_PAD, HEAD_PAD)),
            resident((1, HEAD_PAD)),
        ],
        out_specs=pl.BlockSpec((tm, HEAD_PAD), lambda i: (i, 0)),
        compiler_params=pltpu.CompilerParams(
            dimension_semantics=("parallel",),
            vmem_limit_bytes=32 * 1024 * 1024,
        ),
        cost_estimate=pl.CostEstimate(flops=flops,
                                      transcendentals=transcendentals,
                                      bytes_accessed=bytes_accessed),
    )(x2, w1, b1, w2, b2, wh, bh)

    head = out[:batch].astype(jnp.float32)
    loc = head[:, :CODE_SIZE]
    scale = head[:, CODE_SIZE:2 * CODE_SIZE]

    # Faithfully reproduce torch.diag(torch.diag(scale)) on the (batch, code) matrix
    # (almost certainly an upstream bug — it mixes batch/code axes — but we match it).
    scale_tril = jnp.diag(jnp.diagonal(scale))

    # TODO(synk): torch.distributions.MultivariateNormal(loc, scale_tril=...) is a
    # distribution object with no Pallas equivalent; we return its parameters.
    return loc, scale, scale_tril


def _reference_f32(x, params):
    """Pure-JAX f32 reference of the PyTorch forward."""
    in_dim = params["w1"].shape[0]
    x2 = x.reshape((-1, in_dim)).astype(jnp.float32)
    h = jax.nn.relu(x2 @ params["w1"] + params["b1"])
    h = jax.nn.relu(h @ params["w2"] + params["b2"])
    loc = h @ params["wl"] + params["bl"]
    scale = jax.nn.softplus(h @ params["ws"] + params["bs"])
    return loc, scale


def _reference_bf16(x, params):
    """Mimics the kernel numerics: bf16 inputs/weights/activations, f32 accumulation."""
    bf, f32 = jnp.bfloat16, jnp.float32
    in_dim = params["w1"].shape[0]
    up = lambda a: a.astype(bf).astype(f32)
    x2 = up(x.reshape((-1, in_dim)))
    h = up(jax.nn.relu(x2 @ up(params["w1"]) + params["b1"]))
    h = up(jax.nn.relu(h @ up(params["w2"]) + params["b2"]))
    loc = up(h @ up(params["wl"]) + params["bl"])
    scale = up(jax.nn.softplus(h @ up(params["ws"]) + params["bs"]))
    return loc, scale


if __name__ == "__main__":
    key = jax.random.PRNGKey(0)
    k_param, k_data = jax.random.split(key)

    in_dim = _prob(DATA_SHAPE)          # 784
    params = init_params(k_param, in_dim, HIDDEN, CODE_SIZE)

    batch = 2
    x = jax.random.normal(k_data, (batch, DATA_SHAPE[0], DATA_SHAPE[1]), jnp.float32)

    loc, scale, scale_tril = encoder_forward(x, params)
    jax.block_until_ready((loc, scale, scale_tril))

    assert loc.shape == (batch, CODE_SIZE)
    assert scale.shape == (batch, CODE_SIZE)
    assert scale_tril.shape == (min(batch, CODE_SIZE), min(batch, CODE_SIZE))
    assert bool(jnp.all(scale > 0.0))   # softplus output is strictly positive

    # Tight check against a reference that mimics the kernel's bf16 streaming numerics.
    bloc, bscale = _reference_bf16(x, params)
    assert bool(jnp.allclose(loc, bloc, atol=1e-2, rtol=1e-2))
    assert bool(jnp.allclose(scale, bscale, atol=1e-2, rtol=1e-2))

    # Looser check against the exact f32 PyTorch-equivalent forward.
    floc, fscale = _reference_f32(x, params)
    assert bool(jnp.allclose(loc, floc, atol=5e-2, rtol=5e-2))
    assert bool(jnp.allclose(scale, fscale, atol=5e-2, rtol=5e-2))

    print("KERNEL_OK")
</pallas_src>

<mosaic_0001>
module attributes {stable_mosaic.version = 11 : i64} {
  func.func @encoder_kernel(%arg0: i32, %arg1: memref<128x784xbf16, #tpu.memory_space<vmem>>, %arg2: memref<784x256xbf16, #tpu.memory_space<vmem>>, %arg3: memref<1x256xf32, #tpu.memory_space<vmem>>, %arg4: memref<256x256xbf16, #tpu.memory_space<vmem>>, %arg5: memref<1x256xf32, #tpu.memory_space<vmem>>, %arg6: memref<256x128xbf16, #tpu.memory_space<vmem>>, %arg7: memref<1x128xf32, #tpu.memory_space<vmem>>, %arg8: memref<128x128xbf16, #tpu.memory_space<vmem>>) attributes {dimension_semantics = [#tpu.dimension_semantics<parallel>], iteration_bounds = array<i64: 1>, scalar_prefetch = 0 : i64, scratch_operands = 0 : i64, tpu.core_type = #tpu.core_type<tc>, window_params = [{transform_indices = @transform_0, window_bounds = array<i64: 128, 784>}, {pipeline_mode = #tpu.pipeline_mode<synchronous>, transform_indices = @transform_1, window_bounds = array<i64: 784, 256>}, {pipeline_mode = #tpu.pipeline_mode<synchronous>, transform_indices = @transform_2, window_bounds = array<i64: 1, 256>}, {pipeline_mode = #tpu.pipeline_mode<synchronous>, transform_indices = @transform_3, window_bounds = array<i64: 256, 256>}, {pipeline_mode = #tpu.pipeline_mode<synchronous>, transform_indices = @transform_4, window_bounds = array<i64: 1, 256>}, {pipeline_mode = #tpu.pipeline_mode<synchronous>, transform_indices = @transform_5, window_bounds = array<i64: 256, 128>}, {pipeline_mode = #tpu.pipeline_mode<synchronous>, transform_indices = @transform_6, window_bounds = array<i64: 1, 128>}, {transform_indices = @transform_7, window_bounds = array<i64: 128, 128>}]} {
    %c0 = arith.constant 0 : index
    %c0_0 = arith.constant 0 : index
    %0 = vector.load %arg1[%c0, %c0_0] : memref<128x784xbf16, #tpu.memory_space<vmem>>, vector<128x784xbf16>
    %c0_1 = arith.constant 0 : index
    %c0_2 = arith.constant 0 : index
    %1 = vector.load %arg2[%c0_1, %c0_2] : memref<784x256xbf16, #tpu.memory_space<vmem>>, vector<784x256xbf16>
    %cst = arith.constant dense<0.000000e+00> : vector<128x256xf32>
    %2 = tpu.matmul %0, %1, %cst {dimension_numbers = #tpu.dot_dimension_numbers<[1], [0], [0], [1], [0, 0, 1, 1], [], []>} : vector<128x784xbf16>, vector<784x256xbf16>, vector<128x256xf32> -> vector<128x256xf32>
    %c0_3 = arith.constant 0 : index
    %c0_4 = arith.constant 0 : index
    %3 = vector.load %arg3[%c0_3, %c0_4] : memref<1x256xf32, #tpu.memory_space<vmem>>, vector<1x256xf32>
    %4 = vector.broadcast %3 : vector<1x256xf32> to vector<128x256xf32>
    %5 = arith.addf %2, %4 : vector<128x256xf32>
    %cst_5 = arith.constant 0.000000e+00 : f32
    %6 = vector.broadcast %cst_5 : f32 to vector<128x256xf32>
    %7 = arith.maximumf %5, %6 : vector<128x256xf32>
    %8 = arith.truncf %7 : vector<128x256xf32> to vector<128x256xbf16>
    %c0_6 = arith.constant 0 : index
    %c0_7 = arith.constant 0 : index
    %9 = vector.load %arg4[%c0_6, %c0_7] : memref<256x256xbf16, #tpu.memory_space<vmem>>, vector<256x256xbf16>
    %cst_8 = arith.constant dense<0.000000e+00> : vector<128x256xf32>
    %10 = tpu.matmul %8, %9, %cst_8 {dimension_numbers = #tpu.dot_dimension_numbers<[1], [0], [0], [1], [0, 0, 1, 1], [], []>} : vector<128x256xbf16>, vector<256x256xbf16>, vector<128x256xf32> -> vector<128x256xf32>
    %c0_9 = arith.constant 0 : index
    %c0_10 = arith.constant 0 : index
    %11 = vector.load %arg5[%c0_9, %c0_10] : memref<1x256xf32, #tpu.memory_space<vmem>>, vector<1x256xf32>
    %12 = vector.broadcast %11 : vector<1x256xf32> to vector<128x256xf32>
    %13 = arith.addf %10, %12 : vector<128x256xf32>
    %cst_11 = arith.constant 0.000000e+00 : f32
    %14 = vector.broadcast %cst_11 : f32 to vector<128x256xf32>
    %15 = arith.maximumf %13, %14 : vector<128x256xf32>
    %16 = arith.truncf %15 : vector<128x256xf32> to vector<128x256xbf16>
    %c0_12 = arith.constant 0 : index
    %c0_13 = arith.constant 0 : index
    %17 = vector.load %arg6[%c0_12, %c0_13] : memref<256x128xbf16, #tpu.memory_space<vmem>>, vector<256x128xbf16>
    %cst_14 = arith.constant dense<0.000000e+00> : vector<128x128xf32>
    %18 = tpu.matmul %16, %17, %cst_14 {dimension_numbers = #tpu.dot_dimension_numbers<[1], [0], [0], [1], [0, 0, 1, 1], [], []>} : vector<128x256xbf16>, vector<256x128xbf16>, vector<128x128xf32> -> vector<128x128xf32>
    %c0_15 = arith.constant 0 : index
    %c0_16 = arith.constant 0 : index
    %19 = vector.load %arg7[%c0_15, %c0_16] : memref<1x128xf32, #tpu.memory_space<vmem>>, vector<1x128xf32>
    %20 = vector.broadcast %19 : vector<1x128xf32> to vector<128x128xf32>
    %21 = arith.addf %18, %20 : vector<128x128xf32>
    %cst_17 = arith.constant 0.000000e+00 : f32
    %22 = vector.broadcast %cst_17 : f32 to vector<128x128xf32>
    %23 = arith.maximumf %21, %22 : vector<128x128xf32>
    %24 = math.absf %21 : vector<128x128xf32>
    %cst_18 = arith.constant 0.000000e+00 : f32
    %25 = vector.broadcast %cst_18 : f32 to vector<128x128xf32>
    %26 = arith.subf %25, %24 : vector<128x128xf32>
    %27 = math.exp %26 : vector<128x128xf32>
    %28 = math.log1p %27 : vector<128x128xf32>
    %29 = arith.addf %23, %28 : vector<128x128xf32>
    %30 = tpu.iota {dimensions = array<i32: 1>} : vector<128x128xi32>
    %c2_i32 = arith.constant 2 : i32
    %31 = vector.broadcast %c2_i32 : i32 to vector<128x128xi32>
    %32 = arith.cmpi sge, %30, %31 : vector<128x128xi32>
    %c4_i32 = arith.constant 4 : i32
    %33 = vector.broadcast %c4_i32 : i32 to vector<128x128xi32>
    %34 = arith.cmpi slt, %30, %33 : vector<128x128xi32>
    %35 = arith.andi %32, %34 : vector<128x128xi1>
    %36 = arith.select %35, %29, %21 : vector<128x128xi1>, vector<128x128xf32>
    %37 = arith.truncf %36 : vector<128x128xf32> to vector<128x128xbf16>
    %c0_19 = arith.constant 0 : index
    %c0_20 = arith.constant 0 : index
    %38 = vector.load %arg8[%c0_19, %c0_20] : memref<128x128xbf16, #tpu.memory_space<vmem>>, vector<128x128xbf16>
    tpu.vector_store %arg8[%c0_19, %c0_20], %37 {strides = array<i32>} : memref<128x128xbf16, #tpu.memory_space<vmem>>, vector<128x128xbf16>,
    return
  }
  func.func @transform_0(%arg0: i32) -> (i32, i32) {
    %c0_i32 = arith.constant 0 : i32
    %c0_i32_0 = arith.constant 0 : i32
    return %arg0, %c0_i32 : i32, i32
  }
  func.func @transform_1(%arg0: i32) -> (i32, i32) {
    %c0_i32 = arith.constant 0 : i32
    %c0_i32_0 = arith.constant 0 : i32
    %c0_i32_1 = arith.constant 0 : i32
    return %c0_i32, %c0_i32_0 : i32, i32
  }
  func.func @transform_2(%arg0: i32) -> (i32, i32) {
    %c0_i32 = arith.constant 0 : i32
    %c0_i32_0 = arith.constant 0 : i32
    %c0_i32_1 = arith.constant 0 : i32
    return %c0_i32, %c0_i32_0 : i32, i32
  }
  func.func @transform_3(%arg0: i32) -> (i32, i32) {
    %c0_i32 = arith.constant 0 : i32
    %c0_i32_0 = arith.constant 0 : i32
    %c0_i32_1 = arith.constant 0 : i32
    return %c0_i32, %c0_i32_0 : i32, i32
  }
  func.func @transform_4(%arg0: i32) -> (i32, i32) {
    %c0_i32 = arith.constant 0 : i32
    %c0_i32_0 = arith.constant 0 : i32
    %c0_i32_1 = arith.constant 0 : i32
    return %c0_i32, %c0_i32_0 : i32, i32
  }
  func.func @transform_5(%arg0: i32) -> (i32, i32) {
    %c0_i32 = arith.constant 0 : i32
    %c0_i32_0 = arith.constant 0 : i32
    %c0_i32_1 = arith.constant 0 : i32
    return %c0_i32, %c0_i32_0 : i32, i32
  }
  func.func @transform_6(%arg0: i32) -> (i32, i32) {
    %c0_i32 = arith.constant 0 : i32
    %c0_i32_0 = arith.constant 0 : i32
    %c0_i32_1 = arith.constant 0 : i32
    return %c0_i32, %c0_i32_0 : i32, i32
  }
  func.func @transform_7(%arg0: i32) -> (i32, i32) {
    %c0_i32 = arith.constant 0 : i32
    %c0_i32_0 = arith.constant 0 : i32
    return %arg0, %c0_i32 : i32, i32
  }
}

</mosaic_0001>

<bundles_post_ra>
// kernel: encoder_forward.1
= control target key start
LH: loop header
LB: loop body
LE: loop exit
PB: predicated region body
PF: predicated region fallthrough
CT: control target
= control target key end

     0   :  { %vm971_vm0 = vcmask 130048   ;;  %s4294_s1 = inlined_call_operand.vmem [shape: bf16[784,256], index: 1, kind: input, shape index: {}]   ;;  %s4295_s0 = inlined_call_operand.vmem [shape: bf16[128,784], index: 0, kind: input, shape index: {}]   ;;  %s4296_s3 = inlined_call_operand.vmem [shape: bf16[256,256], index: 3, kind: input, shape index: {}]   ;;  %s4297_s2 = inlined_call_operand.vmem [shape: f32[1,256], index: 2, kind: input, shape index: {}]   ;;  %s4298_s5 = inlined_call_operand.vmem [shape: bf16[256,128], index: 5, kind: input, shape index: {}]   ;;  %s4299_s4 = inlined_call_operand.vmem [shape: f32[1,256], index: 4, kind: input, shape index: {}]   ;;  %s4300_s6 = inlined_call_operand.vmem [shape: f32[1,128], index: 6, kind: input, shape index: {}]   ;;  %s4301_s7 = inlined_call_operand.vmem [shape: bf16[128,128], index: 7, kind: output, shape index: {}]  }
   0x1   :  { %v2793_v0 = vld [vmem:[%s4294_s1 + $0x74] ss:$8 sps:$4 sm:$0xff]   ;;  %v2797_v2 = vld [vmem:[%s4294_s1 + $0x70] ss:$8 sps:$4 sm:$0xff]   ;;  %v2799_v4 = vld [vmem:[%s4294_s1 + $0x64] ss:$8 sps:$4 sm:$0xff]  }
   0x2   :  { %v2795_v1 = vld [vmem:[%s4294_s1 + $0x174] ss:$8 sps:$4 sm:$0xff]   ;;  %996 = vmatprep.subr.bf16.mxu0 %v2793_v0  ;;  %v2798_v3 = vld [vmem:[%s4294_s1 + $0x170] ss:$8 sps:$4 sm:$0xff]   ;;  %v2801_v5 = vld [vmem:[%s4294_s1 + $0x164] ss:$8 sps:$4 sm:$0xff]  }
   0x3   :  { %1109 = vmatprep.subr.bf16.mxu1 %v2795_v1  ;;  %997 = vmatpush1.bf16.msra.mxu0 %v2797_v2  ;;  %v2803_v6 = vld [vmem:[%s4294_s1 + $0x60] ss:$8 sps:$4 sm:$0xff]   ;;  %v2805_v8 = vld [vmem:[%s4294_s1 + $0x54] ss:$8 sps:$4 sm:$0xff]   ;;  %v2809_v10 = vld [vmem:[%s4294_s1 + $0x50] ss:$8 sps:$4 sm:$0xff]  }
   0x4   :  { %1110 = vmatpush1.bf16.msra.mxu1 %v2798_v3  ;;  %998 = vmatprep.subr.bf16.mxu0 %v2799_v4  ;;  %v2804_v7 = vld [vmem:[%s4294_s1 + $0x160] ss:$8 sps:$4 sm:$0xff]   ;;  %v2807_v9 = vld [vmem:[%s4294_s1 + $0x154] ss:$8 sps:$4 sm:$0xff]   ;;  %v2810_v11 = vld [vmem:[%s4294_s1 + $0x150] ss:$8 sps:$4 sm:$0xff]  }
   0x5   :  { %1111 = vmatprep.subr.bf16.mxu1 %v2801_v5  ;;  %v2811_v12 = vld [vmem:[%s4294_s1 + $0x44] ss:$8 sps:$4 sm:$0xff]   ;;  %v2815_v14 = vld [vmem:[%s4294_s1 + $0x40] ss:$8 sps:$4 sm:$0xff]   ;;  %v2817_v16 = vld [vmem:[%s4294_s1 + $0x34] ss:$8 sps:$4 sm:$0xff]  }
   0x6   :  { %v2813_v13 = vld [vmem:[%s4294_s1 + $0x144] ss:$8 sps:$4 sm:$0xff]   ;;  %v2816_v15 = vld [vmem:[%s4294_s1 + $0x140] ss:$8 sps:$4 sm:$0xff]   ;;  %v2819_v17 = vld [vmem:[%s4294_s1 + $0x134] ss:$8 sps:$4 sm:$0xff]  }
   0x7   :  { %999 = vmatpush1.bf16.msra.mxu0 %v2803_v6  ;;  %v2821_v18 = vld [vmem:[%s4294_s1 + $0x30] ss:$8 sps:$4 sm:$0xff]   ;;  %v2823_v20 = vld [vmem:[%s4294_s1 + $0x24] ss:$8 sps:$4 sm:$0xff]   ;;  %v2827_v22 = vld [vmem:[%s4294_s1 + $0x20] ss:$8 sps:$4 sm:$0xff]  }
   0x8   :  { %1112 = vmatpush1.bf16.msra.mxu1 %v2804_v7  ;;  %1000 = vmatprep.subr.bf16.mxu0 %v2805_v8  ;;  %v2822_v19 = vld [vmem:[%s4294_s1 + $0x130] ss:$8 sps:$4 sm:$0xff]   ;;  %v2825_v21 = vld [vmem:[%s4294_s1 + $0x124] ss:$8 sps:$4 sm:$0xff]   ;;  %v2828_v23 = vld [vmem:[%s4294_s1 + $0x120] ss:$8 sps:$4 sm:$0xff]  }
   0x9   :  { %1113 = vmatprep.subr.bf16.mxu1 %v2807_v9  ;;  %v2829_v24 = vld [vmem:[%s4294_s1 + $0x14] ss:$8 sps:$4 sm:$0xff]   ;;  %v2833_v26 = vld [vmem:[%s4294_s1 + $0x10] ss:$8 sps:$4 sm:$0xff]   ;;  %v2835_v28 = vld [vmem:[%s4294_s1 + $0x4] ss:$8 sps:$4 sm:$0xff]  }
   0xa   :  { %v2831_v25 = vld [vmem:[%s4294_s1 + $0x114] ss:$8 sps:$4 sm:$0xff]   ;;  %v2834_v27 = vld [vmem:[%s4294_s1 + $0x110] ss:$8 sps:$4 sm:$0xff]   ;;  %v2837_v29 = vld [vmem:[%s4294_s1 + $0x104] ss:$8 sps:$4 sm:$0xff]  }
   0xb   :  { %1001 = vmatpush1.bf16.msra.mxu0 %v2809_v10  ;;  %v2839_v30 = vld [vmem:[%s4294_s1] ss:$8 sps:$4 sm:$0xff]   ;;  %v2841_v32 = vld [vmem:[%s4294_s1 + $0xf4] ss:$8 sps:$4 sm:$0xff]   ;;  %v2845_v34 = vld [vmem:[%s4294_s1 + $0xf0] ss:$8 sps:$4 sm:$0xff]  }
   0xc   :  { %1114 = vmatpush1.bf16.msra.mxu1 %v2810_v11  ;;  %1002 = vmatprep.subr.bf16.mxu0 %v2811_v12  ;;  %v2840_v31 = vld [vmem:[%s4294_s1 + $0x100] ss:$8 sps:$4 sm:$0xff]   ;;  %v2843_v33 = vld [vmem:[%s4294_s1 + $0x1f4] ss:$8 sps:$4 sm:$0xff]   ;;  %v2846_v35 = vld [vmem:[%s4294_s1 + $0x1f0] ss:$8 sps:$4 sm:$0xff]  }
   0xd   :  { %1115 = vmatprep.subr.bf16.mxu1 %v2813_v13  ;;  %v2847_v36 = vld [vmem:[%s4294_s1 + $0xe4] ss:$8 sps:$4 sm:$0xff]   ;;  %v2851_v38 = vld [vmem:[%s4294_s1 + $0xe0] ss:$8 sps:$4 sm:$0xff]   ;;  %v2853_v40 = vld [vmem:[%s4294_s1 + $0xd4] ss:$8 sps:$4 sm:$0xff]  }
   0xe   :  { %v2849_v37 = vld [vmem:[%s4294_s1 + $0x1e4] ss:$8 sps:$4 sm:$0xff]   ;;  %v2852_v39 = vld [vmem:[%s4294_s1 + $0x1e0] ss:$8 sps:$4 sm:$0xff]   ;;  %v2855_v41 = vld [vmem:[%s4294_s1 + $0x1d4] ss:$8 sps:$4 sm:$0xff]  }
   0xf   :  { %1003 = vmatpush1.bf16.msra.mxu0 %v2815_v14  ;;  %v2857_v42 = vld [vmem:[%s4294_s1 + $0xd0] ss:$8 sps:$4 sm:$0xff]   ;;  %v2859_v44 = vld [vmem:[%s4294_s1 + $0xc4] ss:$8 sps:$4 sm:$0xff]   ;;  %v2863_v46 = vld [vmem:[%s4294_s1 + $0xc0] ss:$8 sps:$4 sm:$0xff]  }
  0x10   :  { %1116 = vmatpush1.bf16.msra.mxu1 %v2816_v15  ;;  %1004 = vmatprep.subr.bf16.mxu0 %v2817_v16  ;;  %v2858_v43 = vld [vmem:[%s4294_s1 + $0x1d0] ss:$8 sps:$4 sm:$0xff]   ;;  %v2861_v45 = vld [vmem:[%s4294_s1 + $0x1c4] ss:$8 sps:$4 sm:$0xff]   ;;  %v2864_v47 = vld [vmem:[%s4294_s1 + $0x1c0] ss:$8 sps:$4 sm:$0xff]  }
  0x11   :  { %1117 = vmatprep.subr.bf16.mxu1 %v2819_v17  ;;  %v2865_v48 = vld [vmem:[%s4294_s1 + $0xb4] ss:$8 sps:$4 sm:$0xff]   ;;  %v2891_v49 = vld [vmem:[%s4295_s0 + $0x4] ss:$28 sps:$4 sm:$0xff]   ;;  %v2894_v51 = vld [vmem:[%s4295_s0 + $0xc] ss:$28 sps:$4 sm:$0xff]  }
  0x12   :  { %v2867_v50 = vld [vmem:[%s4294_s1 + $0x1b4] ss:$8 sps:$4 sm:$0xff]   ;;  %1028 = vmatprep.mubr.bf16.mxu0 %v2891_v49  ;;  %v2869_v52 = vld [vmem:[%s4294_s1 + $0xb0] ss:$8 sps:$4 sm:$0xff]   ;;  %1141 = vmatprep.mubr.bf16.mxu1 %v2894_v51  ;;  %v2871_v54 = vld [vmem:[%s4294_s1 + $0xa4] ss:$8 sps:$4 sm:$0xff]  }
  0x13   :  { %1005 = vmatpush1.bf16.msra.mxu0 %v2821_v18  ;;  %v2870_v53 = vld [vmem:[%s4294_s1 + $0x1b0] ss:$8 sps:$4 sm:$0xff]   ;;  %v2873_v55 = vld [vmem:[%s4294_s1 + $0x1a4] ss:$8 sps:$4 sm:$0xff]   ;;  %v2875_v56 = vld [vmem:[%s4294_s1 + $0xa0] ss:$8 sps:$4 sm:$0xff]  }
  0x14   :  { %1118 = vmatpush1.bf16.msra.mxu1 %v2822_v19  ;;  %1006 = vmatprep.subr.bf16.mxu0 %v2823_v20  ;;  %v2876_v57 = vld [vmem:[%s4294_s1 + $0x1a0] ss:$8 sps:$4 sm:$0xff]   ;;  %v2877_v58 = vld [vmem:[%s4294_s1 + $0x94] ss:$8 sps:$4 sm:$0xff]   ;;  %v2881_v60 = vld [vmem:[%s4294_s1 + $0x90] ss:$8 sps:$4 sm:$0xff]  }
  0x15   :  { %1119 = vmatprep.subr.bf16.mxu1 %v2825_v21  ;;  %v2879_v59 = vld [vmem:[%s4294_s1 + $0x194] ss:$8 sps:$4 sm:$0xff]   ;;  %v2882_v61 = vld [vmem:[%s4294_s1 + $0x190] ss:$8 sps:$4 sm:$0xff]   ;;  %v2883_v62 = vld [vmem:[%s4294_s1 + $0x84] ss:$8 sps:$4 sm:$0xff]  }
  0x16   :  { %v2885_v63 = vld [vmem:[%s4294_s1 + $0x184] ss:$8 sps:$4 sm:$0xff]   ;;  %v2887_v0 = vld [vmem:[%s4294_s1 + $0x80] ss:$8 sps:$4 sm:$0xff]   ;;  %v2897_v2 = vld [vmem:[%s4294_s1 + $0x274] ss:$8 sps:$4 sm:$0xff]  }
  0x17   :  { %1007 = vmatpush1.bf16.msra.mxu0 %v2827_v22  ;;  %v2888_v1 = vld [vmem:[%s4294_s1 + $0x180] ss:$8 sps:$4 sm:$0xff]   ;;  %v2900_v3 = vld [vmem:[%s4294_s1 + $0x304] ss:$8 sps:$4 sm:$0xff]   ;;  %v2895_v6 = vld [vmem:[%s4294_s1 + $0x270] ss:$8 sps:$4 sm:$0xff]  }
  0x18   :  { %1120 = vmatpush1.bf16.msra.mxu1 %v2828_v23  ;;  %1008 = vmatprep.subr.bf16.mxu0 %v2829_v24  ;;  %v2889_v4 = vld [vmem:[%s4295_s0] ss:$28 sps:$4 sm:$0xff]   ;;  %v2892_v5 = vld [vmem:[%s4295_s0 + $0x8] ss:$28 sps:$4 sm:$0xff]   ;;  %v2908_v13 = vld [vmem:[%s4295_s0 + $0x38] ss:$28 sps:$4 sm:$0xff]  }
  0x19   :  { %1121 = vmatprep.subr.bf16.mxu1 %v2831_v25  ;;  %v2898_v7 = vld [vmem:[%s4294_s1 + $0x300] ss:$8 sps:$4 sm:$0xff]   ;;  %v2903_v8 = vld [vmem:[%s4294_s1 + $0x264] ss:$8 sps:$4 sm:$0xff]   ;;  %v2904_v9 = vld [vmem:[%s4295_s0 + $0x3c] ss:$28 sps:$4 sm:$0xff]  }
  0x1a   :  { %v2906_v10 = vld [vmem:[%s4295_s0 + $0x44] ss:$28 sps:$4 sm:$0xff]   ;;  %v2912_v12 = vld [vmem:[%s4294_s1 + $0x254] ss:$8 sps:$4 sm:$0xff]   ;;  %v2910_v15 = vld [vmem:[%s4294_s1 + $0x250] ss:$8 sps:$4 sm:$0xff]  }
  0x1b   :  { %1009 = vmatpush1.bf16.msra.mxu0 %v2833_v26  ;;  %v2901_v11 = vld [vmem:[%s4294_s1 + $0x260] ss:$8 sps:$4 sm:$0xff]   ;;  %v2915_v16 = vld [vmem:[%s4294_s1 + $0x244] ss:$8 sps:$4 sm:$0xff]   ;;  %v2916_v17 = vld [vmem:[%s4295_s0 + $0x74] ss:$28 sps:$4 sm:$0xff]  }
  0x1c   :  { %1122 = vmatpush1.bf16.msra.mxu1 %v2834_v27  ;;  %1010 = vmatprep.subr.bf16.mxu0 %v2835_v28  ;;  %v2909_v14 = vld [vmem:[%s4295_s0 + $0x40] ss:$28 sps:$4 sm:$0xff]   ;;  %v2920_v21 = vld [vmem:[%s4295_s0 + $0x70] ss:$28 sps:$4 sm:$0xff]   ;;  %v2921_v22 = vld [vmem:[%s4295_s0 + $0x78] ss:$28 sps:$4 sm:$0xff]  }
  0x1d   :  { %1123 = vmatprep.subr.bf16.mxu1 %v2837_v29  ;;  %v2918_v18 = vld [vmem:[%s4295_s0 + $0x7c] ss:$28 sps:$4 sm:$0xff]   ;;  %v2913_v19 = vld [vmem:[%s4294_s1 + $0x240] ss:$8 sps:$4 sm:$0xff]   ;;  %v2927_v24 = vld [vmem:[%s4294_s1 + $0x224] ss:$8 sps:$4 sm:$0xff]  }
  0x1e   :  { %v2924_v20 = vld [vmem:[%s4294_s1 + $0x234] ss:$8 sps:$4 sm:$0xff]   ;;  %v2922_v23 = vld [vmem:[%s4294_s1 + $0x230] ss:$8 sps:$4 sm:$0xff]   ;;  %v2928_v25 = vld [vmem:[%s4295_s0 + $0xac] ss:$28 sps:$4 sm:$0xff]  }
  0x1f   :  { %1011 = vmatpush1.bf16.msra.mxu0 %v2839_v30  ;;  %v2930_v26 = vld [vmem:[%s4295_s0 + $0xb4] ss:$28 sps:$4 sm:$0xff]   ;;  %v2925_v27 = vld [vmem:[%s4294_s1 + $0x220] ss:$8 sps:$4 sm:$0xff]   ;;  %v2963_v49 = vld [vmem:[%s4294_s1 + $0x2c4] ss:$8 sps:$4 sm:$0xff]  }
  0x20   :  { %1124 = vmatpush1.bf16.msra.mxu1 %v2840_v31  ;;  %1012 = vmatprep.subr.bf16.mxu0 %v2841_v32  ;;  %v2936_v28 = vld [vmem:[%s4294_s1 + $0x214] ss:$8 sps:$4 sm:$0xff]   ;;  %v2932_v29 = vld [vmem:[%s4295_s0 + $0xa8] ss:$28 sps:$4 sm:$0xff]   ;;  %v2933_v30 = vld [vmem:[%s4295_s0 + $0xb0] ss:$28 sps:$4 sm:$0xff]  }
  0x21   :  { %1125 = vmatprep.subr.bf16.mxu1 %v2843_v33  ;;  %v2934_v31 = vld [vmem:[%s4294_s1 + $0x210] ss:$8 sps:$4 sm:$0xff]   ;;  %v2939_v32 = vld [vmem:[%s4294_s1 + $0x204] ss:$8 sps:$4 sm:$0xff]   ;;  %v2961_v51 = vld [vmem:[%s4294_s1 + $0x2c0] ss:$8 sps:$4 sm:$0xff]  }
  0x22   :  { %v2940_v33 = vld [vmem:[%s4295_s0 + $0xe4] ss:$28 sps:$4 sm:$0xff]  }
  0x23   :  { %1013 = vmatpush2.bf16.msra.mxu0 %v2845_v34  ;;  %v2942_v34 = vld [vmem:[%s4295_s0 + $0xec] ss:$28 sps:$4 sm:$0xff]  }
  0x24   :  { %1126 = vmatpush2.bf16.msra.mxu1 %v2846_v35  ;;  %1014 = vmatprep.subr.bf16.mxu0 %v2847_v36  ;;  %v2937_v35 = vld [vmem:[%s4294_s1 + $0x200] ss:$8 sps:$4 sm:$0xff]  }
  0x25   :  { %1127 = vmatprep.subr.bf16.mxu1 %v2849_v37  ;;  %v2944_v36 = vld [vmem:[%s4295_s0 + $0xe0] ss:$28 sps:$4 sm:$0xff]  }
  0x26   :  { %v2948_v37 = vld [vmem:[%s4294_s1 + $0x2f4] ss:$8 sps:$4 sm:$0xff]  }
  0x27   :  { %1015 = vmatpush2.bf16.msra.mxu0 %v2851_v38  ;;  %v2945_v38 = vld [vmem:[%s4295_s0 + $0xe8] ss:$28 sps:$4 sm:$0xff]  }
  0x28   :  { %1128 = vmatpush2.bf16.msra.mxu1 %v2852_v39  ;;  %1016 = vmatprep.subr.bf16.mxu0 %v2853_v40  ;;  %v2946_v39 = vld [vmem:[%s4294_s1 + $0x2f0] ss:$8 sps:$4 sm:$0xff]   ;;  %v2951_v40 = vld [vmem:[%s4294_s1 + $0x2e4] ss:$8 sps:$4 sm:$0xff]  }
  0x29   :  { %1129 = vmatprep.subr.bf16.mxu1 %v2855_v41  ;;  %v2952_v41 = vld [vmem:[%s4295_s0 + $0x11c] ss:$28 sps:$4 sm:$0xff]  }
  0x2b   :  { %1017 = vmatpush2.bf16.msra.mxu0 %v2857_v42  ;;  %v2954_v42 = vld [vmem:[%s4295_s0 + $0x124] ss:$28 sps:$4 sm:$0xff]  }
  0x2c   :  { %1130 = vmatpush2.bf16.msra.mxu1 %v2858_v43  ;;  %1018 = vmatprep.subr.bf16.mxu0 %v2859_v44  ;;  %v2949_v43 = vld [vmem:[%s4294_s1 + $0x2e0] ss:$8 sps:$4 sm:$0xff]   ;;  %v2956_v44 = vld [vmem:[%s4295_s0 + $0x118] ss:$28 sps:$4 sm:$0xff]  }
  0x2d   :  { %1131 = vmatprep.subr.bf16.mxu1 %v2861_v45  ;;  %v2960_v45 = vld [vmem:[%s4294_s1 + $0x2d4] ss:$8 sps:$4 sm:$0xff]  }
  0x2f   :  { %1019 = vmatpush2.bf16.msra.mxu0 %v2863_v46  ;;  %v2957_v46 = vld [vmem:[%s4295_s0 + $0x120] ss:$28 sps:$4 sm:$0xff]  }
  0x30   :  { %1132 = vmatpush2.bf16.msra.mxu1 %v2864_v47  ;;  %1020 = vmatprep.subr.bf16.mxu0 %v2865_v48  ;;  %v2958_v47 = vld [vmem:[%s4294_s1 + $0x2d0] ss:$8 sps:$4 sm:$0xff]  }
  0x31   :  { %1133 = vmatprep.subr.bf16.mxu1 %v2867_v50  ;;  %v2964_v48 = vld [vmem:[%s4295_s0 + $0x154] ss:$28 sps:$4 sm:$0xff]   ;;  %v2966_v50 = vld [vmem:[%s4295_s0 + $0x15c] ss:$28 sps:$4 sm:$0xff]  }
  0x33   :  { %1021 = vmatpush2.bf16.msra.mxu0 %v2869_v52  ;;  %v2972_v52 = vld [vmem:[%s4294_s1 + $0x2b4] ss:$8 sps:$4 sm:$0xff]  }
  0x34   :  { %1134 = vmatpush2.bf16.msra.mxu1 %v2870_v53  ;;  %1022 = vmatprep.subr.bf16.mxu0 %v2871_v54  ;;  %v2968_v53 = vld [vmem:[%s4295_s0 + $0x150] ss:$28 sps:$4 sm:$0xff]   ;;  %v2969_v54 = vld [vmem:[%s4295_s0 + $0x158] ss:$28 sps:$4 sm:$0xff]  }
  0x35   :  { %1135 = vmatprep.subr.bf16.mxu1 %v2873_v55  ;;  %v2970_v55 = vld [vmem:[%s4294_s1 + $0x2b0] ss:$8 sps:$4 sm:$0xff]  }
  0x37   :  { %1023 = vmatpush2.bf16.msra.mxu0 %v2875_v56  ;;  %v2976_v56 = vld [vmem:[%s4295_s0 + $0x18c] ss:$28 sps:$4 sm:$0xff]  }
  0x38   :  { %1136 = vmatpush2.bf16.msra.mxu1 %v2876_v57  ;;  %1024 = vmatprep.subr.bf16.mxu0 %v2877_v58  ;;  %v2975_v57 = vld [vmem:[%s4294_s1 + $0x2a4] ss:$8 sps:$4 sm:$0xff]   ;;  %v2978_v58 = vld [vmem:[%s4295_s0 + $0x194] ss:$28 sps:$4 sm:$0xff]  }
  0x39   :  { %1137 = vmatprep.subr.bf16.mxu1 %v2879_v59  ;;  %v2973_v59 = vld [vmem:[%s4294_s1 + $0x2a0] ss:$8 sps:$4 sm:$0xff]  }
  0x3b   :  { %1025 = vmatpush2.bf16.msra.mxu0 %v2881_v60  ;;  %v2984_v60 = vld [vmem:[%s4294_s1 + $0x294] ss:$8 sps:$4 sm:$0xff]  }
  0x3c   :  { %1138 = vmatpush2.bf16.msra.mxu1 %v2882_v61  ;;  %1026 = vmatprep.subr.bf16.mxu0 %v2883_v62  ;;  %v2980_v61 = vld [vmem:[%s4295_s0 + $0x188] ss:$28 sps:$4 sm:$0xff]   ;;  %v2981_v62 = vld [vmem:[%s4295_s0 + $0x190] ss:$28 sps:$4 sm:$0xff]  }
  0x3d   :  { %1139 = vmatprep.subr.bf16.mxu1 %v2885_v63  ;;  %v2982_v63 = vld [vmem:[%s4294_s1 + $0x290] ss:$8 sps:$4 sm:$0xff]  }
  0x3f   :  { %1027 = vmatpush2.bf16.msra.mxu0 %v2887_v0  ;;  %v2990_v0 = vld [vmem:[%s4295_s0 + $0x14] ss:$28 sps:$4 sm:$0xff]  }
  0x40   :  { %1140 = vmatpush2.bf16.msra.mxu1 %v2888_v1  ;;  %1222 = vmatprep.subr.bf16.mxu0 %v2897_v2  ;;  %v2987_v1 = vld [vmem:[%s4294_s1 + $0x284] ss:$8 sps:$4 sm:$0xff]   ;;  %v2985_v2 = vld [vmem:[%s4294_s1 + $0x280] ss:$8 sps:$4 sm:$0xff]  }
  0x41   :  { %1349 = vmatprep.subr.bf16.mxu1 %v2900_v3  ;;  %v3148_v3 = vmov 0  }
  0x42   :  { %1029 = vmatmul.mubr.bf16.vlgmr.msra.gmra.mxu0 %v2889_v4  ;;  %v2988_v4 = vld [vmem:[%s4295_s0 + $0x10] ss:$28 sps:$4 sm:$0xff]  }
  0x43   :  { %1142 = vmatmul.mubr.bf16.vlgmr.msra.gmra.mxu1 %v2892_v5  ;;  %1223 = vmatpush1.bf16.msra.mxu0 %v2895_v6  ;;  %v2991_v5 = vld [vmem:[%s4295_s0 + $0x18] ss:$28 sps:$4 sm:$0xff]   ;;  %v2992_v6 = vld [vmem:[%s4295_s0 + $0x4c] ss:$28 sps:$4 sm:$0xff]  }
  0x44   :  { %1350 = vmatpush1.bf16.msra.mxu1 %v2898_v7  ;;  %1224 = vmatprep.subr.bf16.mxu0 %v2903_v8  ;;  %v2994_v7 = vld [vmem:[%s4295_s0 + $0x48] ss:$28 sps:$4 sm:$0xff]   ;;  %v2995_v8 = vld [vmem:[%s4295_s0 + $0x50] ss:$28 sps:$4 sm:$0xff]  }
  0x45   :  { %1038 = vmatprep.mubr.bf16.mxu0 %v2904_v9  ;;  %1151 = vmatprep.mubr.bf16.mxu1 %v2906_v10  ;;  %v2996_v9 = vld [vmem:[%s4295_s0 + $0x84] ss:$28 sps:$4 sm:$0xff]  }
  0x46   :  { %v2998_v10 = vld [vmem:[%s4295_s0 + $0x80] ss:$28 sps:$4 sm:$0xff]  }
  0x47   :  { %1225 = vmatpush1.bf16.msra.mxu0 %v2901_v11  ;;  %v2999_v11 = vld [vmem:[%s4295_s0 + $0x88] ss:$28 sps:$4 sm:$0xff]  }
  0x48   :  { %1226 = vmatprep.subr.bf16.mxu0 %v2912_v12  ;;  %v3000_v12 = vld [vmem:[%s4295_s0 + $0xbc] ss:$28 sps:$4 sm:$0xff]  }
  0x4a   :  { %1039 = vmatmul.mubr.bf16.gmra.mxu0 %v2908_v13  ;;  %v3022_v13 = vld [vmem:[%s4296_s3 + $0x74] ss:$8 sps:$4 sm:$0xff]  }
  0x4b   :  { %1152 = vmatmul.mubr.bf16.gmra.mxu1 %v2909_v14  ;;  %1227 = vmatpush1.bf16.msra.mxu0 %v2910_v15  ;;  %v3020_v14 = vld [vmem:[%s4296_s3 + $0x70] ss:$8 sps:$4 sm:$0xff]  }
  0x4c   :  { %1048 = vmatprep.mubr.bf16.mxu0 %v2916_v17  ;;  %1228 = vmatprep.subr.bf16.mxu0 %v2915_v16  ;;  %v3002_v15 = vld [vmem:[%s4295_s0 + $0xb8] ss:$28 sps:$4 sm:$0xff]   ;;  %v3003_v16 = vld [vmem:[%s4295_s0 + $0xc0] ss:$28 sps:$4 sm:$0xff]   ;;  %v3025_v17 = vld [vmem:[%s4296_s3 + $0x64] ss:$8 sps:$4 sm:$0xff]  }
  0x4d   :  { %1161 = vmatprep.mubr.bf16.mxu1 %v2918_v18  ;;  %v3004_v18 = vld [vmem:[%s4295_s0 + $0xf4] ss:$28 sps:$4 sm:$0xff]  }
  0x4f   :  { %1229 = vmatpush1.bf16.msra.mxu0 %v2913_v19  ;;  %v3023_v19 = vld [vmem:[%s4296_s3 + $0x60] ss:$8 sps:$4 sm:$0xff]  }
  0x50   :  { %1230 = vmatprep.subr.bf16.mxu0 %v2924_v20  ;;  %v3028_v20 = vld [vmem:[%s4296_s3 + $0x54] ss:$8 sps:$4 sm:$0xff]  }
  0x52   :  { %1049 = vmatmul.mubr.bf16.gmra.mxu0 %v2920_v21  ;;  %v3026_v21 = vld [vmem:[%s4296_s3 + $0x50] ss:$8 sps:$4 sm:$0xff]  }
  0x53   :  { %1162 = vmatmul.mubr.bf16.gmra.mxu1 %v2921_v22  ;;  %1231 = vmatpush1.bf16.msra.mxu0 %v2922_v23  ;;  %v3031_v22 = vld [vmem:[%s4296_s3 + $0x44] ss:$8 sps:$4 sm:$0xff]   ;;  %v3029_v23 = vld [vmem:[%s4296_s3 + $0x40] ss:$8 sps:$4 sm:$0xff]  }
  0x54   :  { %1058 = vmatprep.mubr.bf16.mxu0 %v2928_v25  ;;  %1232 = vmatprep.subr.bf16.mxu0 %v2927_v24  ;;  %v3006_v24 = vld [vmem:[%s4295_s0 + $0xf0] ss:$28 sps:$4 sm:$0xff]   ;;  %v3007_v25 = vld [vmem:[%s4295_s0 + $0xf8] ss:$28 sps:$4 sm:$0xff]  }
  0x55   :  { %1171 = vmatprep.mubr.bf16.mxu1 %v2930_v26  ;;  %v3008_v26 = vld [vmem:[%s4295_s0 + $0x12c] ss:$28 sps:$4 sm:$0xff]  }
  0x57   :  { %1233 = vmatpush1.bf16.msra.mxu0 %v2925_v27  ;;  %v3034_v27 = vld [vmem:[%s4296_s3 + $0x34] ss:$8 sps:$4 sm:$0xff]  }
  0x58   :  { %1234 = vmatprep.subr.bf16.mxu0 %v2936_v28  ;;  %v3032_v28 = vld [vmem:[%s4296_s3 + $0x30] ss:$8 sps:$4 sm:$0xff]  }
  0x5a   :  { %1059 = vmatmul.mubr.bf16.gmra.mxu0 %v2932_v29  ;;  %v3037_v29 = vld [vmem:[%s4296_s3 + $0x24] ss:$8 sps:$4 sm:$0xff]  }
  0x5b   :  { %1172 = vmatmul.mubr.bf16.gmra.mxu1 %v2933_v30  ;;  %1235 = vmatpush1.bf16.msra.mxu0 %v2934_v31  ;;  %v3035_v30 = vld [vmem:[%s4296_s3 + $0x20] ss:$8 sps:$4 sm:$0xff]  }
  0x5c   :  { %1068 = vmatprep.mubr.bf16.mxu0 %v2940_v33  ;;  %1236 = vmatprep.subr.bf16.mxu0 %v2939_v32  ;;  %v3010_v31 = vld [vmem:[%s4295_s0 + $0x128] ss:$28 sps:$4 sm:$0xff]   ;;  %v3011_v32 = vld [vmem:[%s4295_s0 + $0x130] ss:$28 sps:$4 sm:$0xff]  }
  0x5d   :  { %1181 = vmatprep.mubr.bf16.mxu1 %v2942_v34  ;;  %v3012_v33 = vld [vmem:[%s4295_s0 + $0x164] ss:$28 sps:$4 sm:$0xff]   ;;  %v3040_v34 = vld [vmem:[%s4296_s3 + $0x14] ss:$8 sps:$4 sm:$0xff]  }
  0x5f   :  { %1237 = vmatpush1.bf16.msra.mxu0 %v2937_v35  ;;  %v3038_v35 = vld [vmem:[%s4296_s3 + $0x10] ss:$8 sps:$4 sm:$0xff]  }
  0x60   :  { %1238 = vmatprep.subr.bf16.mxu0 %v2948_v37  ;;  %v3041_v37 = vld [vmem:[%s4296_s3] ss:$8 sps:$4 sm:$0xff]  }
  0x62   :  { %1069 = vmatmul.mubr.bf16.gmra.mxu0 %v2944_v36  ;;  %v3043_v36 = vld [vmem:[%s4296_s3 + $0x4] ss:$8 sps:$4 sm:$0xff]  }
  0x63   :  { %1182 = vmatmul.mubr.bf16.gmra.mxu1 %v2945_v38  ;;  %1239 = vmatpush2.bf16.msra.mxu0 %v2946_v39  ;;  %v3014_v38 = vld [vmem:[%s4295_s0 + $0x160] ss:$28 sps:$4 sm:$0xff]   ;;  %v3015_v39 = vld [vmem:[%s4295_s0 + $0x168] ss:$28 sps:$4 sm:$0xff]  }
  0x64   :  { %1078 = vmatprep.mubr.bf16.mxu0 %v2952_v41  ;;  %1240 = vmatprep.subr.bf16.mxu0 %v2951_v40  ;;  %v3016_v40 = vld [vmem:[%s4295_s0 + $0x19c] ss:$28 sps:$4 sm:$0xff]  }
  0x65   :  { %1191 = vmatprep.mubr.bf16.mxu1 %v2954_v42  ;;  %v3046_v41 = vld [vmem:[%s4296_s3 + $0xf4] ss:$8 sps:$4 sm:$0xff]   ;;  %v3044_v42 = vld [vmem:[%s4296_s3 + $0xf0] ss:$8 sps:$4 sm:$0xff]  }
  0x67   :  { %1241 = vmatpush2.bf16.msra.mxu0 %v2949_v43  ;;  %v3049_v43 = vld [vmem:[%s4296_s3 + $0xe4] ss:$8 sps:$4 sm:$0xff]  }
  0x68   :  { %1242 = vmatprep.subr.bf16.mxu0 %v2960_v45  ;;  %v3018_v45 = vld [vmem:[%s4295_s0 + $0x198] ss:$28 sps:$4 sm:$0xff]  }
  0x6a   :  { %1079 = vmatmul.mubr.bf16.gmra.mxu0 %v2956_v44  ;;  %v3047_v44 = vld [vmem:[%s4296_s3 + $0xe0] ss:$8 sps:$4 sm:$0xff]  }
  0x6b   :  { %1192 = vmatmul.mubr.bf16.gmra.mxu1 %v2957_v46  ;;  %1243 = vmatpush2.bf16.msra.mxu0 %v2958_v47  ;;  %v3019_v46 = vld [vmem:[%s4295_s0 + $0x1a0] ss:$28 sps:$4 sm:$0xff]  }
  0x6c   :  { %1088 = vmatprep.mubr.bf16.mxu0 %v2964_v48  ;;  %1244 = vmatprep.subr.bf16.mxu0 %v2963_v49  ;;  %v3052_v47 = vld [vmem:[%s4296_s3 + $0xd4] ss:$8 sps:$4 sm:$0xff]   ;;  %v3050_v48 = vld [vmem:[%s4296_s3 + $0xd0] ss:$8 sps:$4 sm:$0xff]   ;;  %v3055_v49 = vld [vmem:[%s4296_s3 + $0xc4] ss:$8 sps:$4 sm:$0xff]  }
  0x6d   :  { %1201 = vmatprep.mubr.bf16.mxu1 %v2966_v50  ;;  %v3053_v50 = vld [vmem:[%s4296_s3 + $0xc0] ss:$8 sps:$4 sm:$0xff]  }
  0x6f   :  { %1245 = vmatpush2.bf16.msra.mxu0 %v2961_v51  ;;  %v3058_v51 = vld [vmem:[%s4296_s3 + $0xb4] ss:$8 sps:$4 sm:$0xff]  }
  0x70   :  { %1246 = vmatprep.subr.bf16.mxu0 %v2972_v52  ;;  %v3056_v52 = vld [vmem:[%s4296_s3 + $0xb0] ss:$8 sps:$4 sm:$0xff]  }
  0x72   :  { %1089 = vmatmul.mubr.bf16.gmra.mxu0 %v2968_v53  ;;  %v3061_v53 = vld [vmem:[%s4296_s3 + $0xa4] ss:$8 sps:$4 sm:$0xff]  }
  0x73   :  { %1202 = vmatmul.mubr.bf16.gmra.mxu1 %v2969_v54  ;;  %1247 = vmatpush2.bf16.msra.mxu0 %v2970_v55  ;;  %v3059_v54 = vld [vmem:[%s4296_s3 + $0xa0] ss:$8 sps:$4 sm:$0xff]   ;;  %v3064_v55 = vld [vmem:[%s4296_s3 + $0x94] ss:$8 sps:$4 sm:$0xff]  }
  0x74   :  { %1098 = vmatprep.mubr.bf16.mxu0 %v2976_v56  ;;  %1248 = vmatprep.subr.bf16.mxu0 %v2975_v57  ;;  %v3062_v56 = vld [vmem:[%s4296_s3 + $0x90] ss:$8 sps:$4 sm:$0xff]   ;;  %v3067_v57 = vld [vmem:[%s4296_s3 + $0x84] ss:$8 sps:$4 sm:$0xff]  }
  0x75   :  { %1211 = vmatprep.mubr.bf16.mxu1 %v2978_v58  ;;  %v3065_v58 = vld [vmem:[%s4296_s3 + $0x80] ss:$8 sps:$4 sm:$0xff]  }
  0x77   :  { %1249 = vmatpush2.bf16.msra.mxu0 %v2973_v59  ;;  %v4302_v59 = vlaneseq }
  0x78   :  { %1250 = vmatprep.subr.bf16.mxu0 %v2984_v60 }
  0x79   :  { %v3764_v60 = vshrl.u32 %v4302_v59, 7 }
  0x7a   :  { %1099 = vmatmul.mubr.bf16.gmra.mxu0 %v2980_v61 }
  0x7b   :  { %1212 = vmatmul.mubr.bf16.gmra.mxu1 %v2981_v62  ;;  %1251 = vmatpush2.bf16.msra.mxu0 %v2982_v63  ;;  %4307 = vst [vmem:[#allocation2_spill] sm:$0xff] %v3764_v60  ;;  %v4303_v61 = vsub.s32 0, %v3764_v60  ;;  %v189_v62 = vld [vmem:[%s4297_s2] sm:$0x3]  ;;  %v4304_v63 = vsub.s32 1, %v3764_v60 }
  0x7c   :  { %1254 = vmatprep.mubr.bf16.mxu0 %v2990_v0  ;;  %1252 = vmatprep.subr.bf16.mxu0 %v2987_v1 }
  0x7d   :  { %1367 = vmatprep.mubr.bf16.mxu1 %v3148_v3  ;;  %v3773_v0 = vrot.slane %v189_v62, %v4303_v61  ;;  %v3777_v1 = vrot.slane %v189_v62, %v4304_v63 }
  0x7f   :  { %1253 = vmatpush2.bf16.msra.mxu0 %v2985_v2 }
  0x80   :  { %1700 = vmatprep.subr.bf16.mxu0 %v3022_v13 }
  0x82   :  { %1255 = vmatmul.mubr.bf16.vlgmr.msra.gmra.mxu0 %v2988_v4 }
  0x83   :  { %2592 = vmatmul.mubr.msk.bf16.vlgmr.msra.gmra.mxu1 %vm971_vm0, %v2991_v5  ;;  %1264 = vmatprep.mubr.bf16.mxu0 %v2992_v6 }
  0x84   :  { %1377 = vmatprep.mubr.bf16.mxu1 %v3148_v3  ;;  %1701 = vmatpush1.bf16.msra.mxu0 %v3020_v14 }
  0x85   :  { %1702 = vmatprep.subr.bf16.mxu0 %v3025_v17  ;;  %v3068_v17 = vld [vmem:[%s4298_s5 + $0x78] sm:$0xff]  }
  0x86   :  { %2728 = vmatprep.subr.bf16.mxu1 %v3068_v17 }
  0x88   :  { %1703 = vmatpush1.bf16.msra.mxu0 %v3023_v19 }
  0x89   :  { %1704 = vmatprep.subr.bf16.mxu0 %v3028_v20  ;;  %v3069_v20 = vld [vmem:[%s4298_s5 + $0x38] sm:$0xff]  }
  0x8a   :  { %1265 = vmatmul.mubr.bf16.gmra.mxu0 %v2994_v7  ;;  %2729 = vmatpush3.bf16.msra.mxu1 %v3069_v20 }
  0x8b   :  { %2593 = vmatmul.mubr.msk.bf16.gmra.mxu1 %vm971_vm0, %v2995_v8  ;;  %1274 = vmatprep.mubr.bf16.mxu0 %v2996_v9 }
  0x8c   :  { %1387 = vmatprep.mubr.bf16.mxu1 %v3148_v3  ;;  %1705 = vmatpush1.bf16.msra.mxu0 %v3026_v21 }
  0x8d   :  { %1706 = vmatprep.subr.bf16.mxu0 %v3031_v22 }
  0x90   :  { %1707 = vmatpush1.bf16.msra.mxu0 %v3029_v23  ;;  %v3070_v23 = vld [vmem:[%s4298_s5 + $0x70] sm:$0xff]  }
  0x91   :  { %1708 = vmatprep.subr.bf16.mxu0 %v3034_v27  ;;  %2730 = vmatprep.subr.bf16.mxu1 %v3070_v23 }
  0x92   :  { %1275 = vmatmul.mubr.bf16.gmra.mxu0 %v2998_v10 }
  0x93   :  { %2594 = vmatmul.mubr.msk.bf16.gmra.mxu1 %vm971_vm0, %v2999_v11  ;;  %1284 = vmatprep.mubr.bf16.mxu0 %v3000_v12 }
  0x94   :  { %1397 = vmatprep.mubr.bf16.mxu1 %v3148_v3  ;;  %1709 = vmatpush1.bf16.msra.mxu0 %v3032_v28  ;;  %v3072_v28 = vld [vmem:[%s4298_s5 + $0x68] sm:$0xff]  }
  0x95   :  { %1710 = vmatprep.subr.bf16.mxu0 %v3037_v29 }
  0x98   :  { %1711 = vmatpush1.bf16.msra.mxu0 %v3035_v30 }
  0x99   :  { %1712 = vmatprep.subr.bf16.mxu0 %v3040_v34 }
  0x9a   :  { %1285 = vmatmul.mubr.bf16.gmra.mxu0 %v3002_v15 }
  0x9b   :  { %2595 = vmatmul.mubr.msk.bf16.gmra.mxu1 %vm971_vm0, %v3003_v16  ;;  %1294 = vmatprep.mubr.bf16.mxu0 %v3004_v18 }
  0x9c   :  { %1407 = vmatprep.mubr.bf16.mxu1 %v3148_v3  ;;  %1713 = vmatpush1.bf16.msra.mxu0 %v3038_v35  ;;  %v3074_v35 = vld [vmem:[%s4298_s5 + $0x60] sm:$0xff]  }
  0x9d   :  { %1714 = vmatprep.subr.bf16.mxu0 %v3043_v36 }
  0xa0   :  { %1715 = vmatpush1.bf16.msra.mxu0 %v3041_v37 }
  0xa1   :  { %1716 = vmatprep.subr.bf16.mxu0 %v3046_v41 }
  0xa2   :  { %1295 = vmatmul.mubr.bf16.gmra.mxu0 %v3006_v24 }
  0xa3   :  { %2596 = vmatmul.mubr.msk.bf16.gmra.mxu1 %vm971_vm0, %v3007_v25  ;;  %1304 = vmatprep.mubr.bf16.mxu0 %v3008_v26  ;;  %v3071_v26 = vld [vmem:[%s4298_s5 + $0x30] sm:$0xff]  }
  0xa4   :  { %1417 = vmatprep.mubr.bf16.mxu1 %v3148_v3  ;;  %1717 = vmatpush2.bf16.msra.mxu0 %v3044_v42  ;;  %v3075_v42 = vld [vmem:[%s4298_s5 + $0x20] sm:$0xff]  }
  0xa5   :  { %1718 = vmatprep.subr.bf16.mxu0 %v3049_v43  ;;  %2731 = vmatpush3.bf16.msra.mxu1 %v3071_v26 }
  0xa6   :  { %2732 = vmatprep.subr.bf16.mxu1 %v3072_v28 }
  0xa8   :  { %1719 = vmatpush2.bf16.msra.mxu0 %v3047_v44  ;;  %v3076_v44 = vld [vmem:[%s4298_s5 + $0x58] sm:$0xff]  }
  0xa9   :  { %1720 = vmatprep.subr.bf16.mxu0 %v3052_v47 }
  0xaa   :  { %1305 = vmatmul.mubr.bf16.gmra.mxu0 %v3010_v31 }
  0xab   :  { %2597 = vmatmul.mubr.msk.bf16.gmra.mxu1 %vm971_vm0, %v3011_v32  ;;  %1314 = vmatprep.mubr.bf16.mxu0 %v3012_v33  ;;  %v3073_v33 = vld [vmem:[%s4298_s5 + $0x28] sm:$0xff]  }
  0xac   :  { %1427 = vmatprep.mubr.bf16.mxu1 %v3148_v3  ;;  %1721 = vmatpush2.bf16.msra.mxu0 %v3050_v48 }
  0xad   :  { %1722 = vmatprep.subr.bf16.mxu0 %v3055_v49  ;;  %2733 = vmatpush3.bf16.msra.mxu1 %v3073_v33  ;;  %v3077_v49 = vld [vmem:[%s4298_s5 + $0x18] sm:$0xff]  }
  0xae   :  { %2734 = vmatprep.subr.bf16.mxu1 %v3074_v35 }
  0xb0   :  { %1723 = vmatpush2.bf16.msra.mxu0 %v3053_v50 }
  0xb1   :  { %1724 = vmatprep.subr.bf16.mxu0 %v3058_v51  ;;  %2735 = vmatpush3.bf16.msra.mxu1 %v3075_v42  ;;  %v3078_v51 = vld [vmem:[%s4298_s5 + $0x50] sm:$0xff]  }
  0xb2   :  { %1315 = vmatmul.mubr.bf16.gmra.mxu0 %v3014_v38  ;;  %2736 = vmatprep.subr.bf16.mxu1 %v3076_v44 }
  0xb3   :  { %2598 = vmatmul.mubr.msk.bf16.gmra.mxu1 %vm971_vm0, %v3015_v39  ;;  %1324 = vmatprep.mubr.bf16.mxu0 %v3016_v40 }
  0xb4   :  { %1437 = vmatprep.mubr.bf16.mxu1 %v3148_v3  ;;  %1725 = vmatpush2.bf16.msra.mxu0 %v3056_v52 }
  0xb5   :  { %1726 = vmatprep.subr.bf16.mxu0 %v3061_v53  ;;  %2737 = vmatpush3.bf16.msra.mxu1 %v3077_v49 }
  0xb6   :  { %2738 = vmatprep.subr.bf16.mxu1 %v3078_v51 }
  0xb8   :  { %1727 = vmatpush2.bf16.msra.mxu0 %v3059_v54 }
  0xb9   :  { %1728 = vmatprep.subr.bf16.mxu0 %v3064_v55 }
  0xba   :  { %1325 = vmatmul.mubr.bf16.gmra.mxu0 %v3018_v45 }
  0xbb   :  { %2599 = vmatmul.mubr.msk.bf16.gmra.mxu1 %vm971_vm0, %v3019_v46 }
  0xbc   :  { %1729 = vmatpush2.bf16.msra.mxu0 %v3062_v56 }
  0xbd   :  { %1730 = vmatprep.subr.bf16.mxu0 %v3067_v57 }
  0xc0   :  { %1731 = vmatpush2.bf16.msra.mxu0 %v3065_v58  ;;  %v3079_v58 = vld [vmem:[%s4298_s5 + $0x10] sm:$0xff]  }
  0xc1   :  { %2739 = vmatpush3.bf16.msra.mxu1 %v3079_v58 }
 0x102   :  { %v1030_v2 = vpop.f32.mrf.mxu0 }
 0x103   :  { %v1143_v3 = vpop.f32.mrf.mxu1  ;;  %v1031_v4 = vadd.f32 %v1030_v2, %v3773_v0  ;;  %v3080_v2 = vld [vmem:[%s4298_s5 + $0x48] sm:$0xff]  }
 0x104   :  { %v1032_v5 = vpop.f32.mrf.mxu0  ;;  %2740 = vmatprep.subr.bf16.mxu1 %v3080_v2 }
 0x105   :  { %v1145_v6 = vpop.f32.mrf.mxu1  ;;  %v3780_v7 = vadd.f32 %v1143_v3, %v1031_v4  ;;  %v1033_v8 = vadd.f32 %v1032_v5, %v3777_v1 }
 0x106   :  { %v3783_v9 = vpop.f32.mrf.mxu0 }
 0x107   :  { %v3785_v10 = vpop.f32.mrf.mxu1  ;;  %v3787_v11 = vadd.f32 %v1145_v6, %v1033_v8  ;;  %v3081_v8 = vld [vmem:[%s4298_s5 + $0x8] sm:$0xff]  }
 0x108   :  { %v3789_v12 = vpop.f32.mrf.mxu0  ;;  %2741 = vmatpush3.bf16.msra.mxu1 %v3081_v8 }
 0x109   :  { %v3791_v13 = vpop.f32.mrf.mxu1 }
 0x10a   :  { %v1040_v14 = vpop.f32.mrf.mxu0 }
 0x10b   :  { %v1153_v15 = vpop.f32.mrf.mxu1  ;;  %v1041_v16 = vadd.f32 %v1040_v14, %v3773_v0 }
 0x10c   :  { %v1042_v18 = vpop.f32.mrf.mxu0 }
 0x10d   :  { %v1155_v19 = vpop.f32.mrf.mxu1  ;;  %v3800_v21 = vadd.f32 %v1153_v15, %v1041_v16  ;;  %v1043_v22 = vadd.f32 %v1042_v18, %v3777_v1 }
 0x10e   :  { %v3806_v24 = vpop.f32.mrf.mxu0 }
 0x10f   :  { %v3808_v25 = vpop.f32.mrf.mxu1  ;;  %v3813_v27 = vadd.f32 %v1155_v19, %v1043_v22 }
 0x110   :  { %v3818_v29 = vpop.f32.mrf.mxu0 }
 0x111   :  { %v3820_v30 = vpop.f32.mrf.mxu1 }
 0x112   :  { %v1050_v31 = vpop.f32.mrf.mxu0 }
 0x113   :  { %v1163_v32 = vpop.f32.mrf.mxu1  ;;  %v1051_v34 = vadd.f32 %v1050_v31, %v3773_v0 }
 0x114   :  { %v1052_v36 = vpop.f32.mrf.mxu0 }
 0x115   :  { %v1165_v37 = vpop.f32.mrf.mxu1  ;;  %v3829_v38 = vadd.f32 %v1163_v32, %v1051_v34  ;;  %v1053_v39 = vadd.f32 %v1052_v36, %v3777_v1 }
 0x116   :  { %v3832_v40 = vpop.f32.mrf.mxu0 }
 0x117   :  { %v3834_v41 = vpop.f32.mrf.mxu1  ;;  %v3839_v43 = vadd.f32 %v1165_v37, %v1053_v39 }
 0x118   :  { %v3844_v45 = vpop.f32.mrf.mxu0 }
 0x119   :  { %v3846_v46 = vpop.f32.mrf.mxu1 }
 0x11a   :  { %v1060_v47 = vpop.f32.mrf.mxu0 }
 0x11b   :  { %v1173_v48 = vpop.f32.mrf.mxu1  ;;  %v1061_v50 = vadd.f32 %v1060_v47, %v3773_v0 }
 0x11c   :  { %v1062_v52 = vpop.f32.mrf.mxu0 }
 0x11d   :  { %v1175_v53 = vpop.f32.mrf.mxu1  ;;  %v3855_v54 = vadd.f32 %v1173_v48, %v1061_v50  ;;  %v1063_v55 = vadd.f32 %v1062_v52, %v3777_v1 }
 0x11e   :  { %v3858_v56 = vpop.f32.mrf.mxu0 }
 0x11f   :  { %v3860_v57 = vpop.f32.mrf.mxu1  ;;  %v3865_v62 = vadd.f32 %v1175_v53, %v1063_v55 }
 0x120   :  { %v3870_v3 = vpop.f32.mrf.mxu0 }
 0x121   :  { %v3872_v4 = vpop.f32.mrf.mxu1 }
 0x122   :  { %v1070_v5 = vpop.f32.mrf.mxu0 }
 0x123   :  { %v1183_v6 = vpop.f32.mrf.mxu1  ;;  %v1071_v14 = vadd.f32 %v1070_v5, %v3773_v0 }
 0x124   :  { %v1072_v15 = vpop.f32.mrf.mxu0 }
 0x125   :  { %v1185_v16 = vpop.f32.mrf.mxu1  ;;  %v3878_v17 = vadd.f32 %v1183_v6, %v1071_v14  ;;  %v1073_v18 = vadd.f32 %v1072_v15, %v3777_v1 }
 0x126   :  { %v3881_v19 = vpop.f32.mrf.mxu0 }
 0x127   :  { %v3883_v20 = vpop.f32.mrf.mxu1  ;;  %v3885_v22 = vadd.f32 %v1185_v16, %v1073_v18 }
 0x128   :  { %v3887_v23 = vpop.f32.mrf.mxu0 }
 0x129   :  { %v3889_v26 = vpop.f32.mrf.mxu1 }
 0x12a   :  { %v1080_v28 = vpop.f32.mrf.mxu0 }
 0x12b   :  { %v1193_v31 = vpop.f32.mrf.mxu1  ;;  %v1081_v32 = vadd.f32 %v1080_v28, %v3773_v0 }
 0x12c   :  { %v1082_v33 = vpop.f32.mrf.mxu0 }
 0x12d   :  { %v1195_v34 = vpop.f32.mrf.mxu1  ;;  %v3892_v35 = vadd.f32 %v1193_v31, %v1081_v32  ;;  %v1083_v36 = vadd.f32 %v1082_v33, %v3777_v1 }
 0x12e   :  { %v3895_v37 = vpop.f32.mrf.mxu0 }
 0x12f   :  { %v3897_v39 = vpop.f32.mrf.mxu1  ;;  %v3899_v42 = vadd.f32 %v1195_v34, %v1083_v36 }
 0x130   :  { %v3901_v44 = vpop.f32.mrf.mxu0 }
 0x131   :  { %v3903_v47 = vpop.f32.mrf.mxu1 }
 0x132   :  { %v1090_v48 = vpop.f32.mrf.mxu0 }
 0x133   :  { %v1203_v49 = vpop.f32.mrf.mxu1  ;;  %v1091_v50 = vadd.f32 %v1090_v48, %v3773_v0 }
 0x134   :  { %v1092_v51 = vpop.f32.mrf.mxu0 }
 0x135   :  { %v1205_v52 = vpop.f32.mrf.mxu1  ;;  %v3906_v53 = vadd.f32 %v1203_v49, %v1091_v50  ;;  %v1093_v55 = vadd.f32 %v1092_v51, %v3777_v1  ;;  %v1035_v50 = vadd.f32 %v3783_v9, %v3773_v0 }
 0x136   :  { %v3909_v58 = vpop.f32.mrf.mxu0 }
 0x137   :  { %v3911_v2 = vpop.f32.mrf.mxu1  ;;  %v3913_v5 = vadd.f32 %v1205_v52, %v1093_v55  ;;  %v1037_v55 = vadd.f32 %v3789_v12, %v3777_v1 }
 0x138   :  { %v3915_v6 = vpop.f32.mrf.mxu0 }
 0x139   :  { %v3917_v8 = vpop.f32.mrf.mxu1  ;;  %v1150_v61 = vadd.f32 %v3791_v13, %v1037_v55 }
 0x13a   :  { %v1100_v14 = vpop.f32.mrf.mxu0 }
 0x13b   :  { %v1213_v15 = vpop.f32.mrf.mxu1  ;;  %v1101_v16 = vadd.f32 %v1100_v14, %v3773_v0 }
 0x13c   :  { %v1102_v18 = vpop.f32.mrf.mxu0 }
 0x13d   :  { %v1215_v28 = vpop.f32.mrf.mxu1  ;;  %v3920_v31 = vadd.f32 %v1213_v15, %v1101_v16  ;;  %v1103_v32 = vadd.f32 %v1102_v18, %v3777_v1  ;;  %v1148_v16 = vadd.f32 %v3785_v10, %v1035_v50 }
 0x13e   :  { %v3923_v33 = vpop.f32.mrf.mxu0 }
 0x13f   :  { %4308 = vst [vmem:[#allocation3_spill] sm:$0xff] %v3920_v31  ;;  %v3925_v34 = vpop.f32.mrf.mxu1  ;;  %v3927_v36 = vadd.f32 %v1215_v28, %v1103_v32 }
 0x140   :  { %4309 = vst [vmem:[#allocation4_spill] sm:$0xff] %v3925_v34  ;;  %v3929_v48 = vpop.f32.mrf.mxu0 }
 0x141   :  { %4310 = vst [vmem:[#allocation5_spill] sm:$0xff] %v3927_v36  ;;  %4311 = vst [vmem:[#allocation6_spill] sm:$0xff] %v3929_v48  ;;  %v3931_v49 = vpop.f32.mrf.mxu1 }
 0x142   :  { %4312 = vst [vmem:[#allocation7_spill] sm:$0xff] %v3931_v49  ;;  %v1256_v51 = vpop.f32.mrf.mxu0  ;;  %v1045_v49 = vadd.f32 %v3806_v24, %v3773_v0 }
 0x143   :  { %v1369_v52 = vpop.f32.mrf.mxu1  ;;  %v1257_v28 = vadd.f32 %v1256_v51, %v3780_v7 }
 0x144   :  { %v1258_v14 = vpop.f32.mrf.mxu0  ;;  %v1158_v13 = vadd.f32 %v3808_v25, %v1045_v49 }
 0x145   :  { %v1371_v15 = vpop.f32.mrf.mxu1  ;;  %v1259_v18 = vadd.f32 %v1258_v14, %v3787_v11  ;;  %v1370_v34 = vadd.f32 %v1369_v52, %v1257_v28  ;;  %v1047_v11 = vadd.f32 %v3818_v29, %v3777_v1  ;;  %v1055_v28 = vadd.f32 %v3832_v40, %v3773_v0 }
 0x146   :  { %v1260_v32 = vpop.f32.mrf.mxu0 }
 0x147   :  { %v1373_v59 = vpop.f32.mrf.mxu1  ;;  %v1261_v63 = vadd.f32 %v1260_v32, %v1148_v16  ;;  %v1372_v31 = vadd.f32 %v1371_v15, %v1259_v18  ;;  %v1448_v24 = vmax.f32 %v1370_v34, 0.0 }
 0x148   :  { %v1262_v60 = vpop.f32.mrf.mxu0 }
 0x149   :  { %v1375_v9 = vpop.f32.mrf.mxu1  ;;  %v1374_v12 = vadd.f32 %v1373_v59, %v1261_v63  ;;  %v1263_v36 = vadd.f32 %v1262_v60, %v1150_v61  ;;  %v1449_v55 = vmax.f32 %v1372_v31, 0.0  ;;  %v1160_v63 = vadd.f32 %v3820_v30, %v1047_v11 }
 0x14a   :  { %v1266_v48 = vpop.f32.mrf.mxu0 }
 0x14b   :  { %v1379_v10 = vpop.f32.mrf.mxu1  ;;  %v1376_v7 = vadd.f32 %v1375_v9, %v1263_v36  ;;  %v1450_v50 = vmax.f32 %v1374_v12, 0.0  ;;  %v1267_v59 = vadd.f32 %v1266_v48, %v3800_v21  ;;  %v1057_v21 = vadd.f32 %v3844_v45, %v3777_v1 }
 0x14c   :  { %v1268_v51 = vpop.f32.mrf.mxu0 }
 0x14d   :  { %v1381_v14 = vpop.f32.mrf.mxu1  ;;  %v1451_v16 = vmax.f32 %v1376_v7, 0.0  ;;  %v1269_v32 = vadd.f32 %v1268_v51, %v3813_v27  ;;  %v1480_v29 = vpack.c.bf16 %v1450_v50, %v1448_v24  ;;  %v1380_v27 = vadd.f32 %v1379_v10, %v1267_v59 }
 0x14e   :  { %v1270_v60 = vpop.f32.mrf.mxu0  ;;  %v1168_v7 = vadd.f32 %v3834_v41, %v1055_v28 }
 0x14f   :  { %v1383_v61 = vpop.f32.mrf.mxu1  ;;  %v1481_v52 = vpack.c.bf16 %v1451_v16, %v1449_v55  ;;  %v1271_v15 = vadd.f32 %v1270_v60, %v1158_v13  ;;  %v1382_v25 = vadd.f32 %v1381_v14, %v1269_v32  ;;  %v1452_v14 = vmax.f32 %v1380_v27, 0.0 }
 0x150   :  { %v1272_v36 = vpop.f32.mrf.mxu0  ;;  %v1170_v16 = vadd.f32 %v3846_v46, %v1057_v21 }
 0x151   :  { %v1385_v18 = vpop.f32.mrf.mxu1  ;;  %v1384_v31 = vadd.f32 %v1383_v61, %v1271_v15  ;;  %v1273_v49 = vadd.f32 %v1272_v36, %v1160_v63  ;;  %1732 = vmatprep.mubr.bf16.mxu0 %v1481_v52  ;;  %v1453_v50 = vmax.f32 %v1382_v25, 0.0  ;;  %v1065_v61 = vadd.f32 %v3858_v56, %v3773_v0 }
 0x152   :  { %v1276_v34 = vpop.f32.mrf.mxu0  ;;  %1733 = vmatmul.mubr.bf16.vlgmr.msra.gmra.mxu0 %v1480_v29 }
 0x153   :  { %v1389_v9 = vpop.f32.mrf.mxu1  ;;  %v1386_v30 = vadd.f32 %v1385_v18, %v1273_v49  ;;  %v1454_v48 = vmax.f32 %v1384_v31, 0.0  ;;  %v1277_v13 = vadd.f32 %v1276_v34, %v3829_v38  ;;  %v1067_v38 = vadd.f32 %v3870_v3, %v3777_v1 }
 0x154   :  { %v1278_v12 = vpop.f32.mrf.mxu0  ;;  %v1178_v25 = vadd.f32 %v3860_v57, %v1065_v61 }
 0x155   :  { %v1391_v11 = vpop.f32.mrf.mxu1  ;;  %v1455_v51 = vmax.f32 %v1386_v30, 0.0  ;;  %v1279_v40 = vadd.f32 %v1278_v12, %v3839_v43  ;;  %v1482_v45 = vpack.c.bf16 %v1454_v48, %v1452_v14  ;;  %v1390_v43 = vadd.f32 %v1389_v9, %v1277_v13 }
 0x156   :  { %v1280_v10 = vpop.f32.mrf.mxu0  ;;  %v1180_v30 = vadd.f32 %v3872_v4, %v1067_v38  ;;  %v1085_v38 = vadd.f32 %v3895_v37, %v3773_v0 }
 0x157   :  { %v1393_v55 = vpop.f32.mrf.mxu1  ;;  %v1483_v32 = vpack.c.bf16 %v1455_v51, %v1453_v50  ;;  %v1281_v24 = vadd.f32 %v1280_v10, %v1168_v7  ;;  %v1392_v41 = vadd.f32 %v1391_v11, %v1279_v40  ;;  %v1456_v27 = vmax.f32 %v1390_v43, 0.0 }
 0x158   :  { %v1282_v59 = vpop.f32.mrf.mxu0  ;;  %v1075_v50 = vadd.f32 %v3881_v19, %v3773_v0 }
 0x159   :  { %v1395_v60 = vpop.f32.mrf.mxu1  ;;  %v1394_v63 = vadd.f32 %v1393_v55, %v1281_v24  ;;  %v1283_v52 = vadd.f32 %v1282_v59, %v1170_v16  ;;  %1742 = vmatprep.mubr.bf16.mxu0 %v1483_v32  ;;  %v1457_v31 = vmax.f32 %v1392_v41, 0.0 }
 0x15a   :  { %v1286_v15 = vpop.f32.mrf.mxu0  ;;  %1743 = vmatmul.mubr.bf16.gmra.mxu0 %v1482_v45  ;;  %v1188_v32 = vadd.f32 %v3883_v20, %v1075_v50 }
 0x15b   :  { %v1399_v29 = vpop.f32.mrf.mxu1  ;;  %v1396_v46 = vadd.f32 %v1395_v60, %v1283_v52  ;;  %v1458_v36 = vmax.f32 %v1394_v63, 0.0  ;;  %v1287_v34 = vadd.f32 %v1286_v15, %v3855_v54  ;;  %v1077_v54 = vadd.f32 %v3887_v23, %v3777_v1 }
 0x15c   :  { %v1288_v18 = vpop.f32.mrf.mxu0 }
 0x15d   :  { %v1401_v28 = vpop.f32.mrf.mxu1  ;;  %v1459_v49 = vmax.f32 %v1396_v46, 0.0  ;;  %v1289_v56 = vadd.f32 %v1288_v18, %v3865_v62  ;;  %v1484_v3 = vpack.c.bf16 %v1458_v36, %v1456_v27  ;;  %v1400_v62 = vadd.f32 %v1399_v29, %v1287_v34 }
 0x15e   :  { %v1290_v9 = vpop.f32.mrf.mxu0  ;;  %v1190_v63 = vadd.f32 %v3889_v26, %v1077_v54 }
 0x15f   :  { %v1403_v21 = vpop.f32.mrf.mxu1  ;;  %v1485_v48 = vpack.c.bf16 %v1459_v49, %v1457_v31  ;;  %v1291_v12 = vadd.f32 %v1290_v9, %v1178_v25  ;;  %v1402_v57 = vadd.f32 %v1401_v28, %v1289_v56  ;;  %v1460_v59 = vmax.f32 %v1400_v62, 0.0 }
 0x160   :  { %v1292_v11 = vpop.f32.mrf.mxu0  ;;  %v1198_v56 = vadd.f32 %v3897_v39, %v1085_v38 }
 0x161   :  { %v1405_v7 = vpop.f32.mrf.mxu1  ;;  %v1404_v51 = vadd.f32 %v1403_v21, %v1291_v12  ;;  %v1293_v40 = vadd.f32 %v1292_v11, %v1180_v30  ;;  %1752 = vmatprep.mubr.bf16.mxu0 %v1485_v48  ;;  %v1461_v24 = vmax.f32 %v1402_v57, 0.0  ;;  %v1095_v57 = vadd.f32 %v3909_v58, %v3773_v0 }
 0x162   :  { %v1296_v14 = vpop.f32.mrf.mxu0  ;;  %1753 = vmatmul.mubr.bf16.gmra.mxu0 %v1484_v3 }
 0x163   :  { %v1409_v13 = vpop.f32.mrf.mxu1  ;;  %v1406_v4 = vadd.f32 %v1405_v7, %v1293_v40  ;;  %v1462_v10 = vmax.f32 %v1404_v51, 0.0  ;;  %v1297_v60 = vadd.f32 %v1296_v14, %v3878_v17  ;;  %v1087_v17 = vadd.f32 %v3901_v44, %v3777_v1 }
 0x164   :  { %v1298_v55 = vpop.f32.mrf.mxu0 }
 0x165   :  { %v1411_v16 = vpop.f32.mrf.mxu1  ;;  %v1463_v45 = vmax.f32 %v1406_v4, 0.0  ;;  %v1299_v19 = vadd.f32 %v1298_v55, %v3885_v22  ;;  %v1486_v23 = vpack.c.bf16 %v1462_v10, %v1460_v59  ;;  %v1410_v22 = vadd.f32 %v1409_v13, %v1297_v60 }
 0x166   :  { %v1300_v61 = vpop.f32.mrf.mxu0  ;;  %v1200_v12 = vadd.f32 %v3903_v47, %v1087_v17  ;;  %v1208_v10 = vadd.f32 %v3911_v2, %v1095_v57 }
 0x167   :  { %v1413_v41 = vpop.f32.mrf.mxu1  ;;  %v1487_v52 = vpack.c.bf16 %v1463_v45, %v1461_v24  ;;  %v1301_v43 = vadd.f32 %v1300_v61, %v1188_v32  ;;  %v1412_v20 = vadd.f32 %v1411_v16, %v1299_v19  ;;  %v1464_v9 = vmax.f32 %v1410_v22, 0.0  ;;  %v4314_v22 = vld [vmem:[#allocation4_spill] sm:$0xff] }
 0x168   :  { %v1302_v15 = vpop.f32.mrf.mxu0 }
 0x169   :  { %v1415_v29 = vpop.f32.mrf.mxu1  ;;  %v1414_v46 = vadd.f32 %v1413_v41, %v1301_v43  ;;  %v1303_v36 = vadd.f32 %v1302_v15, %v1190_v63  ;;  %1762 = vmatprep.mubr.bf16.mxu0 %v1487_v52  ;;  %v1465_v27 = vmax.f32 %v1412_v20, 0.0  ;;  %v1105_v52 = vadd.f32 %v3923_v33, %v3773_v0  ;;  %v4315_v0 = vld [vmem:[#allocation5_spill] sm:$0xff] }
 0x16a   :  { %v1306_v18 = vpop.f32.mrf.mxu0  ;;  %1763 = vmatmul.mubr.bf16.gmra.mxu0 %v1486_v23 }
 0x16b   :  { %v1419_v28 = vpop.f32.mrf.mxu1  ;;  %v1416_v26 = vadd.f32 %v1415_v29, %v1303_v36  ;;  %v1466_v25 = vmax.f32 %v1414_v46, 0.0  ;;  %v1307_v21 = vadd.f32 %v1306_v18, %v3892_v35  ;;  %v1097_v35 = vadd.f32 %v3915_v6, %v3777_v1 }
 0x16c   :  { %v1308_v31 = vpop.f32.mrf.mxu0  ;;  %v1218_v18 = vadd.f32 %v4314_v22, %v1105_v52 }
 0x16d   :  { %v1421_v49 = vpop.f32.mrf.mxu1  ;;  %v1467_v34 = vmax.f32 %v1416_v26, 0.0  ;;  %v1309_v37 = vadd.f32 %v1308_v31, %v3899_v42  ;;  %v1488_v44 = vpack.c.bf16 %v1466_v25, %v1464_v9  ;;  %v1420_v42 = vadd.f32 %v1419_v28, %v1307_v21  ;;  %v4316_v25 = vld [vmem:[#allocation3_spill] sm:$0xff] }
 0x16e   :  { %v1310_v30 = vpop.f32.mrf.mxu0  ;;  %v1210_v59 = vadd.f32 %v3917_v8, %v1097_v35 }
 0x16f   :  { %v1423_v48 = vpop.f32.mrf.mxu1  ;;  %v1489_v3 = vpack.c.bf16 %v1467_v34, %v1465_v27  ;;  %v1311_v11 = vadd.f32 %v1310_v30, %v1198_v56  ;;  %v1422_v39 = vadd.f32 %v1421_v49, %v1309_v37  ;;  %v1468_v32 = vmax.f32 %v1420_v42, 0.0  ;;  %v4317_v27 = vld [vmem:[#allocation7_spill] sm:$0xff]  ;;  %v3082_v42 = vld [vmem:[%s4298_s5 + $0x40] sm:$0xff]  }
 0x170   :  { %v1312_v7 = vpop.f32.mrf.mxu0  ;;  %2742 = vmatprep.subr.bf16.mxu1 %v3082_v42 }
 0x171   :  { %v1425_v50 = vpop.f32.mrf.mxu1  ;;  %v1424_v51 = vadd.f32 %v1423_v48, %v1311_v11  ;;  %v1313_v40 = vadd.f32 %v1312_v7, %v1200_v12  ;;  %1772 = vmatprep.mubr.bf16.mxu0 %v1489_v3  ;;  %v1469_v55 = vmax.f32 %v1422_v39, 0.0 }
 0x172   :  { %v1316_v62 = vpop.f32.mrf.mxu0  ;;  %1773 = vmatmul.mubr.bf16.gmra.mxu0 %v1488_v44 }
 0x173   :  { %v1429_v14 = vpop.f32.mrf.mxu1  ;;  %v1426_v47 = vadd.f32 %v1425_v50, %v1313_v40  ;;  %v1470_v13 = vmax.f32 %v1424_v51, 0.0  ;;  %v1317_v24 = vadd.f32 %v1316_v62, %v3906_v53  ;;  %v4313_v53 = vld [vmem:[#allocation6_spill] sm:$0xff] }
 0x174   :  { %v1318_v54 = vpop.f32.mrf.mxu0  ;;  %v1107_v38 = vadd.f32 %v4313_v53, %v3777_v1  ;;  %v3083_v62 = vld [vmem:[%s4298_s5] sm:$0xff]  }
 0x175   :  { %v1431_v4 = vpop.f32.mrf.mxu1  ;;  %v1471_v16 = vmax.f32 %v1426_v47, 0.0  ;;  %v1319_v58 = vadd.f32 %v1318_v54, %v3913_v5  ;;  %v1490_v6 = vpack.c.bf16 %v1470_v13, %v1468_v32  ;;  %v1430_v5 = vadd.f32 %v1429_v14, %v1317_v24  ;;  %2743 = vmatpush3.bf16.msra.mxu1 %v3083_v62  ;;  %v1528_v14 = vld [vmem:[%s4299_s4] sm:$0x3] }
 0x176   :  { %v1320_v45 = vpop.f32.mrf.mxu0  ;;  %v1220_v34 = vadd.f32 %v4317_v27, %v1107_v38  ;;  %v4318_v47 = vld [vmem:[#allocation2_spill] sm:$0xff] }
 0x177   :  { %v1433_v19 = vpop.f32.mrf.mxu1  ;;  %v1491_v60 = vpack.c.bf16 %v1471_v16, %v1469_v55  ;;  %v1321_v61 = vadd.f32 %v1320_v45, %v1208_v10  ;;  %v1432_v2 = vadd.f32 %v1431_v4, %v1319_v58  ;;  %v1472_v26 = vmax.f32 %v1430_v5, 0.0 }
 0x178   :  { %v1322_v41 = vpop.f32.mrf.mxu0  ;;  %v4319_v13 = vsub.s32 1, %v4318_v47  ;;  %v4320_v4 = vsub.s32 0, %v4318_v47 }
 0x179   :  { %v1435_v63 = vpop.f32.mrf.mxu1  ;;  %v1434_v43 = vadd.f32 %v1433_v19, %v1321_v61  ;;  %v1323_v23 = vadd.f32 %v1322_v41, %v1210_v59  ;;  %1782 = vmatprep.mubr.bf16.mxu0 %v1491_v60  ;;  %v1473_v28 = vmax.f32 %v1432_v2, 0.0 }
 0x17a   :  { %v1326_v15 = vpop.f32.mrf.mxu0  ;;  %1783 = vmatmul.mubr.bf16.gmra.mxu0 %v1490_v6  ;;  %v4008_v54 = vrot.slane %v1528_v14, %v4319_v13  ;;  %v4012_v10 = vrot.slane %v1528_v14, %v4320_v4 }
 0x17b   :  { %v1439_v29 = vpop.f32.mrf.mxu1  ;;  %v1436_v8 = vadd.f32 %v1435_v63, %v1323_v23  ;;  %v1474_v20 = vmax.f32 %v1434_v43, 0.0  ;;  %v1327_v31 = vadd.f32 %v1326_v15, %v4316_v25 }
 0x17c   :  { %v1328_v46 = vpop.f32.mrf.mxu0 }
 0x17d   :  { %v1441_v36 = vpop.f32.mrf.mxu1  ;;  %v1475_v17 = vmax.f32 %v1436_v8, 0.0  ;;  %v1329_v33 = vadd.f32 %v1328_v46, %v4315_v0  ;;  %v1492_v1 = vpack.c.bf16 %v1474_v20, %v1472_v26  ;;  %v1440_v3 = vadd.f32 %v1439_v29, %v1327_v31 }
 0x17e   :  { %v1330_v49 = vpop.f32.mrf.mxu0 }
 0x17f   :  { %v1443_v56 = vpop.f32.mrf.mxu1  ;;  %v1493_v37 = vpack.c.bf16 %v1475_v17, %v1473_v28  ;;  %v1331_v9 = vadd.f32 %v1330_v49, %v1218_v18  ;;  %v1442_v30 = vadd.f32 %v1441_v36, %v1329_v33  ;;  %v1476_v39 = vmax.f32 %v1440_v3, 0.0 }
 0x180   :  { %v1332_v21 = vpop.f32.mrf.mxu0 }
 0x181   :  { %v1444_v48 = vadd.f32 %v1443_v56, %v1331_v9  ;;  %v1333_v12 = vadd.f32 %v1332_v21, %v1220_v34  ;;  %1792 = vmatprep.mubr.bf16.mxu0 %v1493_v37  ;;  %v1445_v11 = vpop.f32.mrf.mxu1  ;;  %v1477_v50 = vmax.f32 %v1442_v30, 0.0 }
 0x182   :  { %1793 = vmatmul.mubr.bf16.gmra.mxu0 %v1492_v1 }
 0x183   :  { %v1446_v44 = vadd.f32 %v1445_v11, %v1333_v12  ;;  %v1478_v7 = vmax.f32 %v1444_v48, 0.0 }
 0x185   :  { %v1479_v57 = vmax.f32 %v1446_v44, 0.0  ;;  %v1494_v40 = vpack.c.bf16 %v1478_v7, %v1476_v39 }
 0x187   :  { %v1495_v51 = vpack.c.bf16 %v1479_v57, %v1477_v50 }
 0x189   :  { %1802 = vmatprep.mubr.bf16.mxu0 %v1495_v51 }
 0x18a   :  { %1803 = vmatmul.mubr.bf16.gmra.mxu0 %v1494_v40 }
 0x212   :  { %v1734_v35 = vpop.f32.mrf.mxu0 }
 0x213   :  { %v1735_v24 = vadd.f32 %v1734_v35, %v4012_v10 }
 0x214   :  { %v1736_v55 = vpop.f32.mrf.mxu0 }
 0x215   :  { %v1737_v58 = vadd.f32 %v1736_v55, %v4008_v54  ;;  %v1813_v41 = vmax.f32 %v1735_v24, 0.0 }
 0x216   :  { %v1738_v16 = vpop.f32.mrf.mxu0 }
 0x217   :  { %v1739_v32 = vadd.f32 %v1738_v16, %v4012_v10  ;;  %v1814_v61 = vmax.f32 %v1737_v58, 0.0 }
 0x218   :  { %v1740_v45 = vpop.f32.mrf.mxu0 }
 0x219   :  { %v1741_v19 = vadd.f32 %v1740_v45, %v4008_v54  ;;  %v1815_v59 = vmax.f32 %v1739_v32, 0.0 }
 0x21a   :  { %v1744_v60 = vpop.f32.mrf.mxu0 }
 0x21b   :  { %v1816_v6 = vmax.f32 %v1741_v19, 0.0  ;;  %v1845_v2 = vpack.c.bf16 %v1815_v59, %v1813_v41  ;;  %v1745_v15 = vadd.f32 %v1744_v60, %v4012_v10 }
 0x21c   :  { %v1746_v63 = vpop.f32.mrf.mxu0 }
 0x21d   :  { %v1846_v52 = vpack.c.bf16 %v1816_v6, %v1814_v61  ;;  %v1747_v23 = vadd.f32 %v1746_v63, %v4008_v54  ;;  %v1817_v36 = vmax.f32 %v1745_v15, 0.0 }
 0x21e   :  { %v1748_v43 = vpop.f32.mrf.mxu0 }
 0x21f   :  { %v1749_v5 = vadd.f32 %v1748_v43, %v4012_v10  ;;  %2028 = vmatprep.mubr.bf16.mxu1 %v1846_v52  ;;  %v1818_v20 = vmax.f32 %v1747_v23, 0.0 }
 0x220   :  { %v1750_v29 = vpop.f32.mrf.mxu0  ;;  %2029 = vmatmul.mubr.bf16.vlgmr.msra.gmra.mxu1 %v1845_v2 }
 0x221   :  { %v1751_v53 = vadd.f32 %v1750_v29, %v4008_v54  ;;  %v1819_v38 = vmax.f32 %v1749_v5, 0.0 }
 0x222   :  { %v1754_v8 = vpop.f32.mrf.mxu0 }
 0x223   :  { %v1820_v46 = vmax.f32 %v1751_v53, 0.0  ;;  %v1847_v28 = vpack.c.bf16 %v1819_v38, %v1817_v36  ;;  %v1755_v26 = vadd.f32 %v1754_v8, %v4012_v10 }
 0x224   :  { %v1756_v22 = vpop.f32.mrf.mxu0 }
 0x225   :  { %v1848_v18 = vpack.c.bf16 %v1820_v46, %v1818_v20  ;;  %v1757_v0 = vadd.f32 %v1756_v22, %v4008_v54  ;;  %v1821_v37 = vmax.f32 %v1755_v26, 0.0 }
 0x226   :  { %v1758_v17 = vpop.f32.mrf.mxu0 }
 0x227   :  { %v1759_v33 = vadd.f32 %v1758_v17, %v4012_v10  ;;  %2036 = vmatprep.mubr.bf16.mxu1 %v1848_v18  ;;  %v1822_v27 = vmax.f32 %v1757_v0, 0.0 }
 0x228   :  { %v1760_v25 = vpop.f32.mrf.mxu0  ;;  %2037 = vmatmul.mubr.bf16.gmra.mxu1 %v1847_v28 }
 0x229   :  { %v1761_v31 = vadd.f32 %v1760_v25, %v4008_v54  ;;  %v1823_v49 = vmax.f32 %v1759_v33, 0.0 }
 0x22a   :  { %v1764_v56 = vpop.f32.mrf.mxu0 }
 0x22b   :  { %v1824_v34 = vmax.f32 %v1761_v31, 0.0  ;;  %v1849_v21 = vpack.c.bf16 %v1823_v49, %v1821_v37  ;;  %v1765_v3 = vadd.f32 %v1764_v56, %v4012_v10 }
 0x22c   :  { %v1766_v9 = vpop.f32.mrf.mxu0 }
 0x22d   :  { %v1850_v1 = vpack.c.bf16 %v1824_v34, %v1822_v27  ;;  %v1767_v48 = vadd.f32 %v1766_v9, %v4008_v54  ;;  %v1825_v51 = vmax.f32 %v1765_v3, 0.0 }
 0x22e   :  { %v1768_v30 = vpop.f32.mrf.mxu0 }
 0x22f   :  { %v1769_v12 = vadd.f32 %v1768_v30, %v4012_v10  ;;  %2044 = vmatprep.mubr.bf16.mxu1 %v1850_v1  ;;  %v1826_v57 = vmax.f32 %v1767_v48, 0.0 }
 0x230   :  { %v1770_v11 = vpop.f32.mrf.mxu0  ;;  %2045 = vmatmul.mubr.bf16.gmra.mxu1 %v1849_v21 }
 0x231   :  { %v1771_v44 = vadd.f32 %v1770_v11, %v4008_v54  ;;  %v1827_v7 = vmax.f32 %v1769_v12, 0.0 }
 0x232   :  { %v1774_v50 = vpop.f32.mrf.mxu0 }
 0x233   :  { %v1828_v39 = vmax.f32 %v1771_v44, 0.0  ;;  %v1851_v62 = vpack.c.bf16 %v1827_v7, %v1825_v51  ;;  %v1775_v13 = vadd.f32 %v1774_v50, %v4012_v10  ;;  %v4049_v50 = vld [vmem:[%s4300_s6] ss:$0 sm:$0xff] }
 0x234   :  { %v1776_v40 = vpop.f32.mrf.mxu0 }
 0x235   :  { %v1852_v42 = vpack.c.bf16 %v1828_v39, %v1826_v57  ;;  %v1777_v35 = vadd.f32 %v1776_v40, %v4008_v54  ;;  %v1829_v45 = vmax.f32 %v1775_v13, 0.0 }
 0x236   :  { %v1778_v14 = vpop.f32.mrf.mxu0 }
 0x237   :  { %v1779_v47 = vadd.f32 %v1778_v14, %v4012_v10  ;;  %2052 = vmatprep.mubr.bf16.mxu1 %v1852_v42  ;;  %v1830_v32 = vmax.f32 %v1777_v35, 0.0 }
 0x238   :  { %v1780_v4 = vpop.f32.mrf.mxu0  ;;  %2053 = vmatmul.mubr.bf16.gmra.mxu1 %v1851_v62 }
 0x239   :  { %v1781_v55 = vadd.f32 %v1780_v4, %v4008_v54  ;;  %v1831_v16 = vmax.f32 %v1779_v47, 0.0 }
 0x23a   :  { %v1784_v58 = vpop.f32.mrf.mxu0 }
 0x23b   :  { %v1832_v24 = vmax.f32 %v1781_v55, 0.0  ;;  %v1853_v60 = vpack.c.bf16 %v1831_v16, %v1829_v45  ;;  %v1785_v63 = vadd.f32 %v1784_v58, %v4012_v10 }
 0x23c   :  { %v1786_v19 = vpop.f32.mrf.mxu0 }
 0x23d   :  { %v1854_v59 = vpack.c.bf16 %v1832_v24, %v1830_v32  ;;  %v1787_v6 = vadd.f32 %v1786_v19, %v4008_v54  ;;  %v1833_v29 = vmax.f32 %v1785_v63, 0.0 }
 0x23e   :  { %v1788_v61 = vpop.f32.mrf.mxu0 }
 0x23f   :  { %v1789_v41 = vadd.f32 %v1788_v61, %v4012_v10  ;;  %2060 = vmatprep.mubr.bf16.mxu1 %v1854_v59  ;;  %v1834_v5 = vmax.f32 %v1787_v6, 0.0 }
 0x240   :  { %v1790_v52 = vpop.f32.mrf.mxu0  ;;  %2061 = vmatmul.mubr.bf16.gmra.mxu1 %v1853_v60 }
 0x241   :  { %v1791_v2 = vadd.f32 %v1790_v52, %v4008_v54  ;;  %v1835_v43 = vmax.f32 %v1789_v41, 0.0 }
 0x242   :  { %v1794_v23 = vpop.f32.mrf.mxu0 }
 0x243   :  { %v1836_v15 = vmax.f32 %v1791_v2, 0.0  ;;  %v1855_v8 = vpack.c.bf16 %v1835_v43, %v1833_v29  ;;  %v1795_v22 = vadd.f32 %v1794_v23, %v4012_v10 }
 0x244   :  { %v1796_v53 = vpop.f32.mrf.mxu0 }
 0x245   :  { %v1856_v38 = vpack.c.bf16 %v1836_v15, %v1834_v5  ;;  %v1797_v46 = vadd.f32 %v1796_v53, %v4008_v54  ;;  %v1837_v25 = vmax.f32 %v1795_v22, 0.0 }
 0x246   :  { %v1798_v20 = vpop.f32.mrf.mxu0 }
 0x247   :  { %v1799_v36 = vadd.f32 %v1798_v20, %v4012_v10  ;;  %2068 = vmatprep.mubr.bf16.mxu1 %v1856_v38  ;;  %v1838_v33 = vmax.f32 %v1797_v46, 0.0 }
 0x248   :  { %v1800_v18 = vpop.f32.mrf.mxu0  ;;  %2069 = vmatmul.mubr.bf16.gmra.mxu1 %v1855_v8 }
 0x249   :  { %v1801_v28 = vadd.f32 %v1800_v18, %v4008_v54  ;;  %v1839_v17 = vmax.f32 %v1799_v36, 0.0 }
 0x24a   :  { %v1804_v0 = vpop.f32.mrf.mxu0 }
 0x24b   :  { %v1840_v26 = vmax.f32 %v1801_v28, 0.0  ;;  %v1857_v56 = vpack.c.bf16 %v1839_v17, %v1837_v25  ;;  %v1805_v9 = vadd.f32 %v1804_v0, %v4012_v10 }
 0x24c   :  { %v1806_v31 = vpop.f32.mrf.mxu0 }
 0x24d   :  { %v1858_v49 = vpack.c.bf16 %v1840_v26, %v1838_v33  ;;  %v1807_v34 = vadd.f32 %v1806_v31, %v4008_v54  ;;  %v1841_v3 = vmax.f32 %v1805_v9, 0.0 }
 0x24e   :  { %v1808_v27 = vpop.f32.mrf.mxu0 }
 0x24f   :  { %v1809_v37 = vadd.f32 %v1808_v27, %v4012_v10  ;;  %2076 = vmatprep.mubr.bf16.mxu1 %v1858_v49  ;;  %v1842_v48 = vmax.f32 %v1807_v34, 0.0 }
 0x250   :  { %v1810_v1 = vpop.f32.mrf.mxu0  ;;  %2077 = vmatmul.mubr.bf16.gmra.mxu1 %v1857_v56 }
 0x251   :  { %v1811_v21 = vadd.f32 %v1810_v1, %v4008_v54  ;;  %v1843_v30 = vmax.f32 %v1809_v37, 0.0 }
 0x253   :  { %v1844_v12 = vmax.f32 %v1811_v21, 0.0  ;;  %v1859_v44 = vpack.c.bf16 %v1843_v30, %v1841_v3 }
 0x255   :  { %v1860_v11 = vpack.c.bf16 %v1844_v12, %v1842_v48 }
 0x257   :  { %2084 = vmatprep.mubr.bf16.mxu1 %v1860_v11  ;;  %v4321_v11 = vlaneseq }
 0x258   :  { %2085 = vmatmul.mubr.bf16.gmra.mxu1 %v1859_v44 }
 0x259   :  { %v2334_v44 = vand.u32 127, %v4321_v11 }
 0x25b   :  { %vm2335_vm1 = vcmp.ge.s32.totalorder %v2334_v44, 2  ;;  %vm2336_vm3 = vcmp.lt.s32.totalorder %v2334_v44, 4 }
 0x25c   :  { %vm4131_vm6 = vmand %vm2335_vm1, %vm2336_vm3 }
 0x2e0   :  { %v2744_v7 = vpop.f32.mrf.mxu1 }
 0x2e2   :  { %v2745_v57 = vpop.f32.mrf.mxu1 }
 0x2e3   :  { %v2746_v10 = vadd.f32 %v2745_v57, %v2744_v7 }
 0x2e4   :  { %v2747_v39 = vpop.f32.mrf.mxu1 }
 0x2e5   :  { %v4052_v51 = vadd.f32 %v2746_v10, %v4049_v50 }
 0x2e6   :  { %v2748_v54 = vpop.f32.mrf.mxu1 }
 0x2e7   :  { %v2109_v40 = vand.u32 2147483647, %v4052_v51  ;;  %v2749_v42 = vadd.f32 %v2748_v54, %v2747_v39 }
 0x2e8   :  { %v2750_v62 = vpop.f32.mrf.mxu1 }
 0x2e9   :  { %v2125_v14 = vsub.f32 0.0, %v2109_v40  ;;  %v4056_v35 = vadd.f32 %v2749_v42, %v4049_v50 }
 0x2ea   :  { %v2751_v47 = vpop.f32.mrf.mxu1 }
 0x2eb   :  { %v2141_v13 = vmul.f32 1.442695, %v2125_v14  ;;  %v2110_v4 = vand.u32 2147483647, %v4056_v35  ;;  %v2752_v55 = vadd.f32 %v2751_v47, %v2750_v62 }
 0x2ec   :  { %v2753_v16 = vpop.f32.mrf.mxu1 }
 0x2ed   :  { %3084 = vpow2.f32 %v2141_v13  ;;  %v2126_v58 = vsub.f32 0.0, %v2110_v4  ;;  %v4060_v32 = vadd.f32 %v2752_v55, %v4049_v50 }
 0x2ee   :  { %v2754_v24 = vpop.f32.mrf.mxu1 }
 0x2ef   :  { %v2143_v45 = vmul.f32 1.442695, %v2126_v58  ;;  %v2111_v19 = vand.u32 2147483647, %v4060_v32  ;;  %v2755_v59 = vadd.f32 %v2754_v24, %v2753_v16 }
 0x2f0   :  { %v2756_v60 = vpop.f32.mrf.mxu1 }
 0x2f1   :  { %3086 = vpow2.f32 %v2143_v45  ;;  %v2127_v61 = vsub.f32 0.0, %v2111_v19  ;;  %v4064_v6 = vadd.f32 %v2755_v59, %v4049_v50 }
 0x2f2   :  { %v2757_v41 = vpop.f32.mrf.mxu1 }
 0x2f3   :  { %v2145_v63 = vmul.f32 1.442695, %v2127_v61  ;;  %v2112_v52 = vand.u32 2147483647, %v4064_v6  ;;  %v2758_v2 = vadd.f32 %v2757_v41, %v2756_v60 }
 0x2f4   :  { %v2759_v43 = vpop.f32.mrf.mxu1 }
 0x2f5   :  { %3088 = vpow2.f32 %v2145_v63  ;;  %v2128_v23 = vsub.f32 0.0, %v2112_v52  ;;  %v4068_v5 = vadd.f32 %v2758_v2, %v4049_v50 }
 0x2f6   :  { %v2760_v15 = vpop.f32.mrf.mxu1 }
 0x2f7   :  { %v2147_v29 = vmul.f32 1.442695, %v2128_v23  ;;  %v2113_v53 = vand.u32 2147483647, %v4068_v5  ;;  %v2761_v38 = vadd.f32 %v2760_v15, %v2759_v43 }
 0x2f8   :  { %v2762_v8 = vpop.f32.mrf.mxu1 }
 0x2f9   :  { %3090 = vpow2.f32 %v2147_v29  ;;  %v2129_v20 = vsub.f32 0.0, %v2113_v53  ;;  %v4072_v46 = vadd.f32 %v2761_v38, %v4049_v50  ;;  %v2093_v29 = vmax.f32 %v4052_v51, 0.0 }
 0x2fa   :  { %v3085_v36 = vpop.eup %3084  ;;  %v2763_v22 = vpop.f32.mrf.mxu1 }
 0x2fb   :  { %v2173_v18 = vadd.f32 1.0, %v3085_v36  ;;  %v2149_v28 = vmul.f32 1.442695, %v2129_v20  ;;  %v2114_v17 = vand.u32 2147483647, %v4072_v46  ;;  %v2764_v0 = vadd.f32 %v2763_v22, %v2762_v8 }
 0x2fc   :  { %v2765_v33 = vpop.f32.mrf.mxu1  ;;  %v2176_v1 = vmul.f32 -0.5, %v3085_v36  ;;  %v2179_v40 = vand.u32 2147483647, %v3085_v36 }
 0x2fd   :  { %3092 = vlog2.f32 %v2173_v18  ;;  %v2130_v25 = vsub.f32 0.0, %v2114_v17  ;;  %v4078_v31 = vadd.f32 %v2764_v0, %v4049_v50  ;;  %v2094_v0 = vmax.f32 %v4056_v35, 0.0 }
 0x2fe   :  { %v4075_v26 = vpop.eup %3086  ;;  %3094 = vpow2.f32 %v2149_v28  ;;  %v2766_v49 = vpop.f32.mrf.mxu1  ;;  %v2177_v54 = vadd.f32 1.0, %v2176_v1  ;;  %vm4098_vm2 = vcmp.lt.f32.partialorder %v2179_v40, 0.0004427343 }
 0x2ff   :  { %v2182_v56 = vadd.f32 1.0, %v4075_v26  ;;  %v2151_v27 = vmul.f32 1.442695, %v2130_v25  ;;  %v2115_v34 = vand.u32 2147483647, %v4078_v31  ;;  %v2767_v37 = vadd.f32 %v2766_v49, %v2765_v33 }
 0x300   :  { %v2768_v9 = vpop.f32.mrf.mxu1  ;;  %v2185_v62 = vmul.f32 -0.5, %v4075_v26  ;;  %v2178_v45 = vmul.f32 %v3085_v36, %v2177_v54  ;;  %v2188_v43 = vand.u32 2147483647, %v4075_v26  ;;  %v2095_v25 = vmax.f32 %v4060_v32, 0.0 }
 0x301   :  { %3096 = vlog2.f32 %v2182_v56  ;;  %v2131_v30 = vsub.f32 0.0, %v2115_v34  ;;  %v4085_v48 = vadd.f32 %v2767_v37, %v4049_v50 }
 0x302   :  { %v4082_v21 = vpop.eup %3088  ;;  %3098 = vpow2.f32 %v2151_v27  ;;  %v2769_v12 = vpop.f32.mrf.mxu1  ;;  %v2186_v60 = vadd.f32 1.0, %v2185_v62  ;;  %vm2189_vm4 = vcmp.lt.f32.partialorder %v2188_v43, 0.0004427343 }
 0x303   :  { %v2191_v3 = vadd.f32 1.0, %v4082_v21  ;;  %v2153_v7 = vmul.f32 1.442695, %v2131_v30  ;;  %v2116_v57 = vand.u32 2147483647, %v4085_v48  ;;  %v2770_v10 = vadd.f32 %v2769_v12, %v2768_v9 }
 0x304   :  { %v2771_v39 = vpop.f32.mrf.mxu1  ;;  %v2194_v23 = vmul.f32 -0.5, %v4082_v21  ;;  %v2197_v53 = vand.u32 2147483647, %v4082_v21  ;;  %v2187_v33 = vmul.f32 %v4075_v26, %v2186_v60 }
 0x305   :  { %3100 = vlog2.f32 %v2191_v3  ;;  %v2132_v14 = vsub.f32 0.0, %v2116_v57  ;;  %v4094_v47 = vadd.f32 %v2770_v10, %v4049_v50 }
 0x306   :  { %v4090_v42 = vpop.eup %3090  ;;  %3102 = vpow2.f32 %v2153_v7  ;;  %v2772_v13 = vpop.f32.mrf.mxu1  ;;  %v2195_v34 = vadd.f32 1.0, %v2194_v23  ;;  %vm4124_vm5 = vcmp.lt.f32.partialorder %v2197_v53, 0.0004427343  ;;  %v2096_v53 = vmax.f32 %v4064_v6, 0.0 }
 0x307   :  { %v2200_v4 = vadd.f32 1.0, %v4090_v42  ;;  %v2155_v55 = vmul.f32 1.442695, %v2132_v14  ;;  %v2117_v16 = vand.u32 2147483647, %v4094_v47  ;;  %v2773_v58 = vadd.f32 %v2772_v13, %v2771_v39 }
 0x308   :  { %v2774_v24 = vpop.f32.mrf.mxu1  ;;  %v2203_v22 = vmul.f32 -0.5, %v4090_v42  ;;  %v2196_v44 = vmul.f32 %v4082_v21, %v2195_v34 }
 0x309   :  { %3104 = vlog2.f32 %v2200_v4  ;;  %v2133_v61 = vsub.f32 0.0, %v2117_v16  ;;  %v4103_v41 = vadd.f32 %v2773_v58, %v4049_v50  ;;  %v2206_v58 = vand.u32 2147483647, %v4090_v42 }
 0x30a   :  { %v3093_v59 = vpop.eup %3092  ;;  %3106 = vpow2.f32 %v2155_v55  ;;  %v2775_v63 = vpop.f32.mrf.mxu1  ;;  %v2204_v11 = vadd.f32 1.0, %v2203_v22 }
 0x30b   :  { %v4105_v52 = vpop.eup %3094  ;;  %v2175_v2 = vmul.f32 0.6931472, %v3093_v59  ;;  %v2776_v15 = vadd.f32 %v2775_v63, %v2774_v24  ;;  %v2157_v8 = vmul.f32 1.442695, %v2133_v61  ;;  %v2118_v18 = vand.u32 2147483647, %v4103_v41 }
 0x30c   :  { %v2209_v38 = vadd.f32 1.0, %v4105_v52  ;;  %v2777_v20 = vpop.f32.mrf.mxu1  ;;  %v2212_v54 = vmul.f32 -0.5, %v4105_v52  ;;  %v2205_v21 = vmul.f32 %v4090_v42, %v2204_v11  ;;  %vm2207_vm7 = vcmp.lt.f32.partialorder %v2206_v58, 0.0004427343 }
 0x30d   :  { %v2181_v36 = vsel %vm4098_vm2, %v2178_v45, %v2175_v2  ;;  %v4117_v28 = vadd.f32 %v2776_v15, %v4049_v50  ;;  %v2134_v37 = vsub.f32 0.0, %v2118_v18 }
 0x30e   :  { %v3097_v17 = vpop.eup %3096  ;;  %3108 = vlog2.f32 %v2209_v38  ;;  %v2778_v49 = vpop.f32.mrf.mxu1  ;;  %v2317_v9 = vadd.f32 %v2181_v36, %v2093_v29  ;;  %v2213_v63 = vadd.f32 1.0, %v2212_v54 }
 0x30f   :  { %v4122_v56 = vpop.eup %3098  ;;  %v2184_v27 = vmul.f32 0.6931472, %v3097_v17  ;;  %3110 = vpow2.f32 %v2157_v8  ;;  %v2159_v7 = vmul.f32 1.442695, %v2134_v37  ;;  %v2119_v57 = vand.u32 2147483647, %v4117_v28 }
 0x310   :  { %v2218_v30 = vadd.f32 1.0, %v4122_v56  ;;  %v2780_v12 = vpop.f32.mrf.mxu1  ;;  %v2779_v40 = vadd.f32 %v2778_v49, %v2777_v20  ;;  %v2338_v55 = vsel %vm4131_vm6, %v2317_v9, %v4052_v51  ;;  %v2215_v51 = vand.u32 2147483647, %v4105_v52 }
 0x311   :  { %v2190_v3 = vsel %vm2189_vm4, %v2187_v33, %v2184_v27  ;;  %v2135_v4 = vsub.f32 0.0, %v2119_v57  ;;  %v2221_v15 = vmul.f32 -0.5, %v4122_v56  ;;  %v2097_v20 = vmax.f32 %v4068_v5, 0.0 }
 0x312   :  { %v3101_v10 = vpop.eup %3100  ;;  %v2318_v39 = vadd.f32 %v2190_v3, %v2094_v0  ;;  %3112 = vlog2.f32 %v2218_v30  ;;  %v2781_v62 = vpop.f32.mrf.mxu1  ;;  %v4153_v2 = vadd.f32 %v2779_v40, %v4049_v50  ;;  %vm4166_vm8 = vcmp.lt.f32.partialorder %v2215_v51, 0.0004427343 }
 0x313   :  { %v4137_v14 = vpop.eup %3102  ;;  %v2193_v13 = vmul.f32 0.6931472, %v3101_v10  ;;  %3114 = vpow2.f32 %v2159_v7  ;;  %v2161_v60 = vmul.f32 1.442695, %v2135_v4  ;;  %v2782_v42 = vadd.f32 %v2781_v62, %v2780_v12 }
 0x314   :  { %v2339_v16 = vsel %vm4131_vm6, %v2318_v39, %v4056_v35  ;;  %v2227_v24 = vadd.f32 1.0, %v4137_v14  ;;  %v2783_v45 = vpop.f32.mrf.mxu1  ;;  %v2230_v36 = vmul.f32 -0.5, %v4137_v14  ;;  %v2120_v22 = vand.u32 2147483647, %v4153_v2 }
 0x315   :  { %v2684_v19 = vpack.c.bf16 %v2339_v16, %v2338_v55  ;;  %v2199_v59 = vsel %vm4124_vm5, %v2196_v44, %v2193_v13  ;;  %v4171_v33 = vadd.f32 %v2782_v42, %v4049_v50  ;;  %v2214_v49 = vmul.f32 %v4105_v52, %v2213_v63 }
 0x316   :  { %v3105_v61 = vpop.eup %3104  ;;  %3116 = vlog2.f32 %v2227_v24  ;;  %v2784_v35 = vpop.f32.mrf.mxu1  ;;  %v2319_v29 = vadd.f32 %v2199_v59, %v2095_v25  ;;  %v2222_v27 = vadd.f32 1.0, %v2221_v15  ;;  %v2136_v34 = vsub.f32 0.0, %v2120_v22 }
 0x317   :  { %v4155_v43 = vpop.eup %3106  ;;  %2685 = vst [vmem:[%s4301_s7] sm:$0xff] %v2684_v19   ;;  %v2202_v23 = vmul.f32 0.6931472, %v3105_v61  ;;  %3118 = vpow2.f32 %v2161_v60  ;;  %v2785_v37 = vadd.f32 %v2784_v35, %v2783_v45  ;;  %v2224_v3 = vand.u32 2147483647, %v4122_v56 }
 0x318   :  { %v2236_v38 = vadd.f32 1.0, %v4155_v43  ;;  %v2786_v18 = vpop.f32.mrf.mxu1  ;;  %v2340_v1 = vsel %vm4131_vm6, %v2319_v29, %v4060_v32  ;;  %v2231_v7 = vadd.f32 1.0, %v2230_v36  ;;  %v2233_v52 = vand.u32 2147483647, %v4137_v14 }
 0x319   :  { %v2208_v8 = vsel %vm2207_vm7, %v2205_v21, %v2202_v23  ;;  %v2163_v54 = vmul.f32 1.442695, %v2136_v34  ;;  %v2121_v32 = vand.u32 2147483647, %v4171_v33  ;;  %v4189_v40 = vadd.f32 %v2785_v37, %v4049_v50 }
 0x31a   :  { %v2320_v17 = vadd.f32 %v2208_v8, %v2096_v53  ;;  %3120 = vlog2.f32 %v2236_v38  ;;  %v2787_v10 = vpop.f32.mrf.mxu1  ;;  %v2098_v62 = vmax.f32 %v4072_v46, 0.0  ;;  %v2223_v13 = vmul.f32 %v4122_v56, %v2222_v27 }
 0x31b   :  { %v3109_v25 = vpop.eup %3108  ;;  %v2239_v44 = vmul.f32 -0.5, %v4155_v43  ;;  %v2137_v16 = vsub.f32 0.0, %v2121_v32  ;;  %v2788_v58 = vadd.f32 %v2787_v10, %v2786_v18  ;;  %vm2225_vm9 = vcmp.lt.f32.partialorder %v2224_v3, 0.0004427343 }
 0x31c   :  { %v4174_v9 = vpop.eup %3110  ;;  %v2341_v30 = vsel %vm4131_vm6, %v2320_v17, %v4064_v6  ;;  %v2211_v12 = vmul.f32 0.6931472, %v3109_v25  ;;  %vm4199_vm10 = vcmp.lt.f32.partialorder %v2233_v52, 0.0004427343  ;;  %v2232_v56 = vmul.f32 %v4137_v14, %v2231_v7  ;;  %v2789_v61 = vpop.f32.mrf.mxu1 }
 0x31d   :  { %v2689_v11 = vpack.c.bf16 %v2341_v30, %v2340_v1  ;;  %v2245_v57 = vadd.f32 1.0, %v4174_v9  ;;  %v2165_v21 = vmul.f32 1.442695, %v2137_v16  ;;  %v2122_v60 = vand.u32 2147483647, %v4189_v40 }
 0x31e   :  { %v2217_v39 = vsel %vm4166_vm8, %v2214_v49, %v2211_v12  ;;  %v2240_v35 = vadd.f32 1.0, %v2239_v44  ;;  %v2248_v23 = vmul.f32 -0.5, %v4174_v9  ;;  %v4210_v53 = vadd.f32 %v2788_v58, %v4049_v50  ;;  %v2790_v17 = vpop.f32.mrf.mxu1 }
 0x31f   :  { %v3113_v6 = vpop.eup %3112  ;;  %2721 = vst [vmem:[%s4301_s7 + $0x8] sm:$0xff] %v2689_v11   ;;  %3122 = vlog2.f32 %v2245_v57  ;;  %v2321_v24 = vadd.f32 %v2217_v39, %v2097_v20  ;;  %v2138_v29 = vsub.f32 0.0, %v2122_v60  ;;  %v2242_v8 = vand.u32 2147483647, %v4155_v43 }
 0x320   :  { %v4197_v4 = vpop.eup %3114  ;;  %v2220_v55 = vmul.f32 0.6931472, %v3113_v6  ;;  %3124 = vpow2.f32 %v2163_v54  ;;  %v2099_v25 = vmax.f32 %v4078_v31, 0.0  ;;  %v2241_v49 = vmul.f32 %v4155_v43, %v2240_v35 }
 0x321   :  { %v2254_v19 = vadd.f32 1.0, %v4197_v4  ;;  %v2342_v14 = vsel %vm4131_vm6, %v2321_v24, %v4068_v5  ;;  %v2167_v18 = vmul.f32 1.442695, %v2138_v29  ;;  %v2249_v5 = vadd.f32 1.0, %v2248_v23 }
 0x322   :  { %v2226_v59 = vsel %vm2225_vm9, %v2223_v13, %v2220_v55  ;;  %v2257_v27 = vmul.f32 -0.5, %v4197_v4  ;;  %v2123_v34 = vand.u32 2147483647, %v4210_v53  ;;  %v2100_v1 = vmax.f32 %v4085_v48, 0.0 }
 0x323   :  { %v3117_v63 = vpop.eup %3116  ;;  %v2322_v51 = vadd.f32 %v2226_v59, %v2098_v62  ;;  %3126 = vlog2.f32 %v2254_v19  ;;  %vm2243_vm11 = vcmp.lt.f32.partialorder %v2242_v8, 0.0004427343  ;;  %v2791_v30 = vadd.f32 %v2790_v17, %v2789_v61 }
 0x324   :  { %v4207_v15 = vpop.eup %3118  ;;  %v2229_v42 = vmul.f32 0.6931472, %v3117_v63  ;;  %3128 = vpow2.f32 %v2165_v21  ;;  %v2251_v43 = vand.u32 2147483647, %v4174_v9  ;;  %v2139_v3 = vsub.f32 0.0, %v2123_v34 }
 0x325   :  { %v2343_v38 = vsel %vm4131_vm6, %v2322_v51, %v4072_v46  ;;  %v2263_v20 = vadd.f32 1.0, %v4207_v15  ;;  %v4232_v7 = vadd.f32 %v2791_v30, %v4049_v50  ;;  %v2250_v57 = vmul.f32 %v4174_v9, %v2249_v5 }
 0x326   :  { %v2694_v36 = vpack.c.bf16 %v2343_v38, %v2342_v14  ;;  %v2235_v22 = vsel %vm4199_vm10, %v2232_v56, %v2229_v42  ;;  %v2258_v10 = vadd.f32 1.0, %v2257_v27  ;;  %v2169_v39 = vmul.f32 1.442695, %v2139_v3 }
 0x327   :  { %v3121_v0 = vpop.eup %3120  ;;  %3130 = vlog2.f32 %v2263_v20  ;;  %v2323_v37 = vadd.f32 %v2235_v22, %v2099_v25  ;;  %v2124_v13 = vand.u32 2147483647, %v4232_v7  ;;  %vm2252_vm12 = vcmp.lt.f32.partialorder %v2251_v43, 0.0004427343 }
 0x328   :  { %2722 = vst [vmem:[%s4301_s7 + $0x10] sm:$0xff] %v2694_v36   ;;  %v2238_v46 = vmul.f32 0.6931472, %v3121_v0  ;;  %3132 = vpow2.f32 %v2167_v18  ;;  %v2260_v50 = vand.u32 2147483647, %v4197_v4  ;;  %v2102_v24 = vmax.f32 %v4103_v41, 0.0 }
 0x329   :  { %v2344_v32 = vsel %vm4131_vm6, %v2323_v37, %v4078_v31  ;;  %3134 = vpow2.f32 %v2169_v39  ;;  %v2140_v16 = vsub.f32 0.0, %v2124_v13  ;;  %v2101_v31 = vmax.f32 %v4094_v47, 0.0 }
 0x32a   :  { %v2244_v12 = vsel %vm2243_vm11, %v2241_v49, %v2238_v46  ;;  %v2259_v19 = vmul.f32 %v4197_v4, %v2258_v10  ;;  %vm2261_vm13 = vcmp.lt.f32.partialorder %v2260_v50, 0.0004427343  ;;  %v2266_v21 = vmul.f32 -0.5, %v4207_v15 }
 0x32b   :  { %v2324_v11 = vadd.f32 %v2244_v12, %v2100_v1  ;;  %v2171_v59 = vmul.f32 1.442695, %v2140_v16  ;;  %v2269_v8 = vand.u32 2147483647, %v4207_v15  ;;  %v2103_v25 = vmax.f32 %v4117_v28, 0.0 }
 0x32c   :  { %v3123_v52 = vpop.eup %3122  ;;  %v2267_v29 = vadd.f32 1.0, %v2266_v21  ;;  %v2104_v30 = vmax.f32 %v4153_v2, 0.0 }
 0x32d   :  { %v3125_v54 = vpop.eup %3124  ;;  %v2345_v6 = vsel %vm4131_vm6, %v2324_v11, %v4085_v48  ;;  %v2247_v62 = vmul.f32 0.6931472, %v3123_v52  ;;  %vm2270_vm14 = vcmp.lt.f32.partialorder %v2269_v8, 0.0004427343 }
 0x32e   :  { %v2699_v44 = vpack.c.bf16 %v2345_v6, %v2344_v32  ;;  %v2272_v55 = vadd.f32 1.0, %v3125_v54  ;;  %v2275_v23 = vmul.f32 -0.5, %v3125_v54  ;;  %v2268_v22 = vmul.f32 %v4207_v15, %v2267_v29 }
 0x32f   :  { %v2253_v9 = vsel %vm2252_vm12, %v2250_v57, %v2247_v62 }
 0x330   :  { %v3127_v58 = vpop.eup %3126  ;;  %2723 = vst [vmem:[%s4301_s7 + $0x18] sm:$0xff] %v2699_v44   ;;  %3136 = vlog2.f32 %v2272_v55  ;;  %v2325_v56 = vadd.f32 %v2253_v9, %v2101_v31  ;;  %v2276_v36 = vadd.f32 1.0, %v2275_v23  ;;  %v2105_v44 = vmax.f32 %v4171_v33, 0.0 }
 0x331   :  { %v3129_v48 = vpop.eup %3128  ;;  %v2256_v45 = vmul.f32 0.6931472, %v3127_v58  ;;  %3138 = vpow2.f32 %v2171_v59  ;;  %v2107_v23 = vmax.f32 %v4210_v53, 0.0 }
 0x332   :  { %v2281_v60 = vadd.f32 1.0, %v3129_v48  ;;  %v2346_v42 = vsel %vm4131_vm6, %v2325_v56, %v4094_v47  ;;  %v2284_v18 = vmul.f32 -0.5, %v3129_v48  ;;  %v2278_v47 = vand.u32 2147483647, %v3125_v54 }
 0x333   :  { %v2262_v61 = vsel %vm2261_vm13, %v2259_v19, %v2256_v45  ;;  %v2277_v49 = vmul.f32 %v3125_v54, %v2276_v36  ;;  %v2287_v34 = vand.u32 2147483647, %v3129_v48 }
 0x334   :  { %v3131_v63 = vpop.eup %3130  ;;  %v2326_v51 = vadd.f32 %v2262_v61, %v2102_v24  ;;  %3140 = vlog2.f32 %v2281_v60  ;;  %v2285_v27 = vadd.f32 1.0, %v2284_v18  ;;  %vm2279_vm15 = vcmp.lt.f32.partialorder %v2278_v47, 0.0004427343 }
 0x335   :  { %v3133_v35 = vpop.eup %3132  ;;  %v2265_v20 = vmul.f32 0.6931472, %v3131_v63  ;;  %vm2288_vm0 = vcmp.lt.f32.partialorder %v2287_v34, 0.0004427343 }
 0x336   :  { %v2347_v4 = vsel %vm4131_vm6, %v2326_v51, %v4103_v41  ;;  %v2290_v14 = vadd.f32 1.0, %v3133_v35  ;;  %v3135_v17 = vpop.eup %3134  ;;  %v2293_v37 = vmul.f32 -0.5, %v3133_v35  ;;  %v2286_v57 = vmul.f32 %v3129_v48, %v2285_v27 }
 0x337   :  { %v2704_v38 = vpack.c.bf16 %v2347_v4, %v2346_v42  ;;  %v2271_v0 = vsel %vm2270_vm14, %v2268_v22, %v2265_v20  ;;  %v2299_v5 = vadd.f32 1.0, %v3135_v17  ;;  %v2296_v32 = vand.u32 2147483647, %v3133_v35 }
 0x338   :  { %3142 = vlog2.f32 %v2290_v14  ;;  %v2327_v1 = vadd.f32 %v2271_v0, %v2103_v25  ;;  %v2294_v10 = vadd.f32 1.0, %v2293_v37  ;;  %v2302_v50 = vmul.f32 -0.5, %v3135_v17 }
 0x339   :  { %2724 = vst [vmem:[%s4301_s7 + $0x20] sm:$0xff] %v2704_v38   ;;  %3144 = vlog2.f32 %v2299_v5  ;;  %vm2297_vm1 = vcmp.lt.f32.partialorder %v2296_v32, 0.0004427343  ;;  %v2305_v24 = vand.u32 2147483647, %v3135_v17 }
 0x33a   :  { %v2348_v39 = vsel %vm4131_vm6, %v2327_v1, %v4117_v28  ;;  %v2295_v9 = vmul.f32 %v3133_v35, %v2294_v10  ;;  %v2106_v28 = vmax.f32 %v4189_v40, 0.0  ;;  %v2303_v31 = vadd.f32 1.0, %v2302_v50 }
 0x33b   :  { %vm2306_vm2 = vcmp.lt.f32.partialorder %v2305_v24, 0.0004427343 }
 0x33c   :  { %v2304_v60 = vmul.f32 %v3135_v17, %v2303_v31 }
 0x33d   :  { %v3137_v41 = vpop.eup %3136 }
 0x33e   :  { %v2274_v46 = vmul.f32 0.6931472, %v3137_v41  ;;  %v3139_v15 = vpop.eup %3138 }
 0x33f   :  { %v2308_v11 = vadd.f32 1.0, %v3139_v15  ;;  %v2311_v48 = vmul.f32 -0.5, %v3139_v15  ;;  %v2314_v63 = vand.u32 2147483647, %v3139_v15 }
 0x340   :  { %v2280_v12 = vsel %vm2279_vm15, %v2277_v49, %v2274_v46 }
 0x341   :  { %v3141_v43 = vpop.eup %3140  ;;  %v2328_v3 = vadd.f32 %v2280_v12, %v2104_v30  ;;  %3146 = vlog2.f32 %v2308_v11  ;;  %v2312_v61 = vadd.f32 1.0, %v2311_v48  ;;  %vm2315_vm3 = vcmp.lt.f32.partialorder %v2314_v63, 0.0004427343 }
 0x342   :  { %v2283_v52 = vmul.f32 0.6931472, %v3141_v43 }
 0x343   :  { %v2349_v54 = vsel %vm4131_vm6, %v2328_v3, %v4153_v2  ;;  %v2313_v42 = vmul.f32 %v3139_v15, %v2312_v61 }
 0x344   :  { %v2709_v6 = vpack.c.bf16 %v2349_v54, %v2348_v39  ;;  %v2289_v62 = vsel %vm2288_vm0, %v2286_v57, %v2283_v52 }
 0x345   :  { %v3143_v13 = vpop.eup %3142  ;;  %v2329_v16 = vadd.f32 %v2289_v62, %v2105_v44 }
 0x346   :  { %2725 = vst [vmem:[%s4301_s7 + $0x28] sm:$0xff] %v2709_v6   ;;  %v2292_v55 = vmul.f32 0.6931472, %v3143_v13  ;;  %v3145_v59 = vpop.eup %3144 }
 0x347   :  { %v2350_v45 = vsel %vm4131_vm6, %v2329_v16, %v4171_v33  ;;  %v2301_v21 = vmul.f32 0.6931472, %v3145_v59 }
 0x348   :  { %v2298_v58 = vsel %vm2297_vm1, %v2295_v9, %v2292_v55 }
 0x349   :  { %v2330_v2 = vadd.f32 %v2298_v58, %v2106_v28  ;;  %v2307_v51 = vsel %vm2306_vm2, %v2304_v60, %v2301_v21 }
 0x34a   :  { %v2331_v4 = vadd.f32 %v2307_v51, %v2107_v23 }
 0x34b   :  { %v2351_v19 = vsel %vm4131_vm6, %v2330_v2, %v4189_v40  ;;  %v2108_v40 = vmax.f32 %v4232_v7, 0.0 }
 0x34c   :  { %v2714_v56 = vpack.c.bf16 %v2351_v19, %v2350_v45  ;;  %v2352_v38 = vsel %vm4131_vm6, %v2331_v4, %v4210_v53 }
 0x34e   :  { %2726 = vst [vmem:[%s4301_s7 + $0x30] sm:$0xff] %v2714_v56   ;;  %v3147_v35 = vpop.eup %3146 }
 0x34f   :  { %v2310_v33 = vmul.f32 0.6931472, %v3147_v35 }
 0x351   :  { %v2316_v29 = vsel %vm2315_vm3, %v2313_v42, %v2310_v33 }
 0x352   :  { %v2332_v14 = vadd.f32 %v2316_v29, %v2108_v40 }
 0x354   :  { %v2353_v8 = vsel %vm4131_vm6, %v2332_v14, %v4232_v7 }
 0x355   :  { %v2719_v20 = vpack.c.bf16 %v2353_v8, %v2352_v38 }
 0x357   :  { %2727 = vst [vmem:[%s4301_s7 + $0x38] sm:$0xff] %v2719_v20  }

</bundles_post_ra>
